<compile_context>
chip_gen: v5e
topology: v5e:2x2
jax: 0.10.0
libtpu: 0.0.40
codegen_flags: <defaults>
</compile_context>

<pallas_src>
import functools

import jax
import jax.numpy as jnp
from jax.experimental import pallas as pl
from jax.experimental.pallas import tpu as pltpu


def _sigmoid(v):
    # Exact rewrite of sigmoid via tanh (EUP unit); avoids relying on logistic lowering.
    return 0.5 * (jnp.tanh(0.5 * v) + 1.0)


def lelg_lstm_kernel(*refs, num_layers, num_experts, hidden_size):
    L, k, H = num_layers, num_experts, hidden_size
    n_in = 3 + 8 * L + 4
    in_refs = refs[:n_in]
    o_ref, h_out_ref, c_out_ref = refs[n_in:n_in + 3]
    h_s, c_s = refs[n_in + 3:]

    x_ref, h0_ref, c0_ref = in_refs[:3]
    layer_refs = in_refs[3:3 + 8 * L]
    wg_o_ref, bg_o_ref, wo_ref, bo_ref = in_refs[3 + 8 * L:]

    t = pl.program_id(1)

    # Recurrent state carried in VMEM scratch across the (arbitrary) time axis.
    @pl.when(t == 0)
    def _init():
        h_s[...] = h0_ref[...]
        c_s[...] = c0_ref[...]

    def moo(inp, wg_ref, bg_ref, w_ref, b_ref):
        """Mixture-of-outputs: gate over k experts + one stacked expert matmul."""
        n_out = w_ref.shape[-1] // k
        # All k experts in a single bf16 MXU matmul, f32 accumulation.
        out_all = jnp.dot(inp.astype(jnp.bfloat16), w_ref[...],
                          preferred_element_type=jnp.float32) + b_ref[...]
        base = out_all[:, :n_out]
        if k == 2:
            # softmax over 2 experts == sigmoid of the logit difference.
            # wg_ref holds (Wg[:,1]-Wg[:,0]) as a (1, in) row -> VPU mul + reduce.
            z = jnp.sum(inp * wg_ref[0], axis=-1, keepdims=True) + bg_ref[0]
            c1 = _sigmoid(z)                               # weight of expert 1
            return base + c1 * (out_all[:, n_out:2 * n_out] - base)
        # General k: softmax gate (small matmul), convex combination.
        logits = jnp.dot(inp, wg_ref[0], preferred_element_type=jnp.float32) + bg_ref[0]
        logits = logits - jnp.max(logits, axis=-1, keepdims=True)
        expw = jnp.exp(logits)
        coef = expw * pl.reciprocal(jnp.sum(expw, axis=-1, keepdims=True), approx=False)
        mixed = base
        for e in range(1, k):
            mixed = mixed + coef[:, e:e + 1] * (out_all[:, e * n_out:(e + 1) * n_out] - base)
        return mixed

    x_in = x_ref[0]                                        # (Bt, input) f32
    for l in range(L):
        wgx, bgx, wgh, bgh, wx, bx, wh, bh = layer_refs[8 * l:8 * (l + 1)]
        h_prev = h_s[l]
        c_prev = c_s[l]
        gates = moo(x_in, wgx, bgx, wx, bx) + moo(h_prev, wgh, bgh, wh, bh)
        i_g = _sigmoid(gates[:, 0 * H:1 * H])
        f_g = _sigmoid(gates[:, 1 * H:2 * H])
        g_g = jnp.tanh(gates[:, 2 * H:3 * H])
        o_g = _sigmoid(gates[:, 3 * H:4 * H])
        c_new = f_g * c_prev + i_g * g_g
        h_new = o_g * jnp.tanh(c_new)
        h_s[l] = h_new
        c_s[l] = c_new
        x_in = h_new

    # Output head; classes are zero-padded to a lane-dense width in the wrapper.
    o_ref[0] = moo(x_in, wg_o_ref, bg_o_ref, wo_ref, bo_ref).astype(o_ref.dtype)

    @pl.when(t == pl.num_programs(1) - 1)
    def _finalize():
        h_out_ref[...] = h_s[...]
        c_out_ref[...] = c_s[...]


def lelg_lstm_forward(x, h0, c0, params, *, num_layers, num_experts, hidden_size,
                      num_classes, batch_tile=None, input_lengths=None):
    del input_lengths  # unused by the PyTorch forward as well
    T, B, I = x.shape
    L, k, H, C = num_layers, num_experts, hidden_size, num_classes
    Bt = B if batch_tile is None else batch_tile
    assert B % Bt == 0
    Cp = ((C + 127) // 128) * 128                          # lane-dense output width

    f32, bf16 = jnp.float32, jnp.bfloat16

    def stack_experts(w, pad_to=None):                     # (k, in, out) -> (in, k*out)
        kk, fin, fout = w.shape
        if pad_to is not None and pad_to != fout:
            w = jnp.pad(w, ((0, 0), (0, 0), (0, pad_to - fout)))
            fout = pad_to
        return jnp.transpose(w, (1, 0, 2)).reshape(fin, kk * fout)

    def stack_bias(b, pad_to=None):                        # (k, out) -> (1, k*out)
        kk, fout = b.shape
        if pad_to is not None and pad_to != fout:
            b = jnp.pad(b, ((0, 0), (0, pad_to - fout)))
            fout = pad_to
        return b.reshape(1, kk * fout)

    def gate_args(wg, bg):                                 # wg: (T,in,k), bg: (T,1,k)
        if k == 2:
            wgd = (wg[:, :, 1] - wg[:, :, 0])[:, None, :]  # (T, 1, in)
            bgd = (bg[:, :, 1] - bg[:, :, 0])[:, :, None]  # (T, 1, 1)
            return wgd.astype(f32), bgd.astype(f32)
        return wg.astype(f32), bg.astype(f32)

    args = [x.astype(f32), h0.astype(f32), c0.astype(f32)]
    in_specs = [
        pl.BlockSpec((1, Bt, I), lambda b, t: (t, b, 0)),
        pl.BlockSpec((L, Bt, H), lambda b, t: (0, b, 0)),
        pl.BlockSpec((L, Bt, H), lambda b, t: (0, b, 0)),
    ]

    def add_time_arg(a):                                   # streamed per time step
        args.append(a)
        nz = a.ndim - 1
        in_specs.append(
            pl.BlockSpec((1,) + a.shape[1:], lambda b, t, _nz=nz: (t,) + (0,) * _nz))

    def add_shared_arg(a):                                 # VMEM-resident (index fixed)
        args.append(a)
        nd = a.ndim
        in_specs.append(pl.BlockSpec(a.shape, lambda b, t, _nd=nd: (0,) * _nd))

    for l in range(L):
        wgx, bgx = gate_args(params['wg_x'][l], params['bg_x'][l])
        wgh, bgh = gate_args(params['wg_h'][l], params['bg_h'][l])
        add_time_arg(wgx)
        add_time_arg(bgx)
        add_time_arg(wgh)
        add_time_arg(bgh)
        add_shared_arg(stack_experts(params['Wx'][l]).astype(bf16))
        add_shared_arg(stack_bias(params['bx'][l]).astype(f32))
        add_shared_arg(stack_experts(params['Wh'][l]).astype(bf16))
        add_shared_arg(stack_bias(params['bh'][l]).astype(f32))

    wgo, bgo = gate_args(params['wg_o'], params['bg_o'])
    add_time_arg(wgo)
    add_time_arg(bgo)
    add_shared_arg(stack_experts(params['Wo'], pad_to=Cp).astype(bf16))
    add_shared_arg(stack_bias(params['bo'], pad_to=Cp).astype(f32))

    out_shape = (
        jax.ShapeDtypeStruct((T, B, Cp), f32),
        jax.ShapeDtypeStruct((L, B, H), f32),
        jax.ShapeDtypeStruct((L, B, H), f32),
    )
    out_specs = (
        pl.BlockSpec((1, Bt, Cp), lambda b, t: (t, b, 0)),
        pl.BlockSpec((L, Bt, H), lambda b, t: (0, b, 0)),
        pl.BlockSpec((L, Bt, H), lambda b, t: (0, b, 0)),
    )

    o_pad, h_fin, c_fin = pl.pallas_call(
        functools.partial(lelg_lstm_kernel, num_layers=L, num_experts=k,
                          hidden_size=H),
        out_shape=out_shape,
        grid=(B // Bt, T),
        in_specs=in_specs,
        out_specs=out_specs,
        scratch_shapes=[pltpu.VMEM((L, Bt, H), jnp.float32),
                        pltpu.VMEM((L, Bt, H), jnp.float32)],
        compiler_params=pltpu.CompilerParams(
            dimension_semantics=("parallel", "arbitrary"),
            vmem_limit_bytes=32 * 1024 * 1024),
    )(*args)

    return o_pad[..., :C], (h_fin, c_fin)


def init_params(key, input_size, hidden_size, num_classes, num_layers, num_experts,
                seq_len):
    I, H, C, L, k, T = input_size, hidden_size, num_classes, num_layers, num_experts, seq_len
    stdv = 1.0 / (H ** 0.5)

    def uni(kk, shape, scale):
        return jax.random.uniform(kk, shape, jnp.float32, -scale, scale)

    keys = iter(jax.random.split(key, 8 * L + 4))
    params = {'wg_x': [], 'bg_x': [], 'wg_h': [], 'bg_h': [],
              'Wx': [], 'bx': [], 'Wh': [], 'bh': []}
    for l in range(L):
        in_l = I if l == 0 else H
        gs = 1.0 / (in_l ** 0.5)
        params['wg_x'].append(uni(next(keys), (T, in_l, k), gs))     # per-time gates
        params['bg_x'].append(uni(next(keys), (T, 1, k), gs))
        params['wg_h'].append(uni(next(keys), (T, H, k), stdv))
        params['bg_h'].append(uni(next(keys), (T, 1, k), stdv))
        params['Wx'].append(uni(next(keys), (k, in_l, 4 * H), stdv))  # shared experts
        params['bx'].append(uni(next(keys), (k, 4 * H), stdv))
        params['Wh'].append(uni(next(keys), (k, H, 4 * H), stdv))
        params['bh'].append(uni(next(keys), (k, 4 * H), stdv))
    params['wg_o'] = uni(next(keys), (T, H, k), stdv)
    params['bg_o'] = uni(next(keys), (T, 1, k), stdv)
    params['Wo'] = uni(next(keys), (k, H, C), stdv)
    params['bo'] = uni(next(keys), (k, C), stdv)
    return params


def reference_forward(x, h0, c0, params, *, num_layers, num_experts, hidden_size,
                      num_classes):
    L, k, H = num_layers, num_experts, hidden_size
    T = x.shape[0]

    def moo(inp, wg, bg, W, b):
        coef = jax.nn.softmax(inp @ wg + bg, axis=1)
        out = jnp.zeros((inp.shape[0], W.shape[-1]), jnp.float32)
        for e in range(k):
            out = out + coef[:, e:e + 1] * (inp @ W[e] + b[e])
        return out

    h, c = h0, c0
    outs = []
    for t in range(T):
        x_in = x[t]
        hs, cs = [], []
        for l in range(L):
            gates = (moo(x_in, params['wg_x'][l][t], params['bg_x'][l][t],
                         params['Wx'][l], params['bx'][l])
                     + moo(h[l], params['wg_h'][l][t], params['bg_h'][l][t],
                           params['Wh'][l], params['bh'][l]))
            i_g = jax.nn.sigmoid(gates[:, 0:H])
            f_g = jax.nn.sigmoid(gates[:, H:2 * H])
            g_g = jnp.tanh(gates[:, 2 * H:3 * H])
            o_g = jax.nn.sigmoid(gates[:, 3 * H:4 * H])
            c_l = f_g * c[l] + i_g * g_g
            h_l = o_g * jnp.tanh(c_l)
            hs.append(h_l)
            cs.append(c_l)
            x_in = h_l
        h = jnp.stack(hs)
        c = jnp.stack(cs)
        outs.append(moo(x_in, params['wg_o'][t], params['bg_o'][t],
                        params['Wo'], params['bo']))
    return jnp.stack(outs), (h, c)


if __name__ == "__main__":
    seq_len = 8        # T (== number of cells created by setKT)
    batch = 8
    input_size = 16
    hidden_size = 32
    num_classes = 8
    num_layers = 2
    num_experts = 2    # k

    key = jax.random.PRNGKey(0)
    kx, kh, kc, kp = jax.random.split(key, 4)
    x = jax.random.normal(kx, (seq_len, batch, input_size), jnp.float32)
    h0 = jax.random.normal(kh, (num_layers, batch, hidden_size), jnp.float32) * 0.1
    c0 = jax.random.normal(kc, (num_layers, batch, hidden_size), jnp.float32) * 0.1
    params = init_params(kp, input_size, hidden_size, num_classes, num_layers,
                         num_experts, seq_len)

    o, (h_fin, c_fin) = lelg_lstm_forward(
        x, h0, c0, params, num_layers=num_layers, num_experts=num_experts,
        hidden_size=hidden_size, num_classes=num_classes)
    o, h_fin, c_fin = jax.block_until_ready((o, h_fin, c_fin))

    o_ref, (h_ref, c_ref) = reference_forward(
        x, h0, c0, params, num_layers=num_layers, num_experts=num_experts,
        hidden_size=hidden_size, num_classes=num_classes)

    assert o.shape == (seq_len, batch, num_classes)
    assert h_fin.shape == (num_layers, batch, hidden_size)
    assert c_fin.shape == (num_layers, batch, hidden_size)
    # bf16 MXU operands in the kernel vs f32 reference -> loosened tolerance.
    assert jnp.allclose(o, o_ref, atol=2e-2, rtol=2e-2), \
        float(jnp.max(jnp.abs(o - o_ref)))
    assert jnp.allclose(h_fin, h_ref, atol=2e-2, rtol=2e-2)
    assert jnp.allclose(c_fin, c_ref, atol=2e-2, rtol=2e-2)

    print("KERNEL_OK")
</pallas_src>

<mosaic_0001>
module attributes {stable_mosaic.version = 11 : i64} {
  func.func @lelg_lstm_kernel(%arg0: i32, %arg1: i32, %arg2: memref<1x8x16xf32, #tpu.memory_space<vmem>>, %arg3: memref<2x8x32xf32, #tpu.memory_space<vmem>>, %arg4: memref<2x8x32xf32, #tpu.memory_space<vmem>>, %arg5: memref<1x1x16xf32, #tpu.memory_space<vmem>>, %arg6: memref<1x1x1xf32, #tpu.memory_space<vmem>>, %arg7: memref<1x1x32xf32, #tpu.memory_space<vmem>>, %arg8: memref<1x1x1xf32, #tpu.memory_space<vmem>>, %arg9: memref<16x256xbf16, #tpu.memory_space<vmem>>, %arg10: memref<1x256xf32, #tpu.memory_space<vmem>>, %arg11: memref<32x256xbf16, #tpu.memory_space<vmem>>, %arg12: memref<1x256xf32, #tpu.memory_space<vmem>>, %arg13: memref<1x1x32xf32, #tpu.memory_space<vmem>>, %arg14: memref<1x1x1xf32, #tpu.memory_space<vmem>>, %arg15: memref<1x1x32xf32, #tpu.memory_space<vmem>>, %arg16: memref<1x1x1xf32, #tpu.memory_space<vmem>>, %arg17: memref<32x256xbf16, #tpu.memory_space<vmem>>, %arg18: memref<1x256xf32, #tpu.memory_space<vmem>>, %arg19: memref<32x256xbf16, #tpu.memory_space<vmem>>, %arg20: memref<1x256xf32, #tpu.memory_space<vmem>>, %arg21: memref<1x1x32xf32, #tpu.memory_space<vmem>>, %arg22: memref<1x1x1xf32, #tpu.memory_space<vmem>>, %arg23: memref<32x256xbf16, #tpu.memory_space<vmem>>, %arg24: memref<1x256xf32, #tpu.memory_space<vmem>>, %arg25: memref<1x8x128xf32, #tpu.memory_space<vmem>>, %arg26: memref<2x8x32xf32, #tpu.memory_space<vmem>>, %arg27: memref<2x8x32xf32, #tpu.memory_space<vmem>>, %arg28: memref<2x8x32xf32, #tpu.memory_space<vmem>>, %arg29: memref<2x8x32xf32, #tpu.memory_space<vmem>>) attributes {dimension_semantics = [#tpu.dimension_semantics<parallel>, #tpu.dimension_semantics<arbitrary>], iteration_bounds = array<i64: 1, 8>, scalar_prefetch = 0 : i64, scratch_operands = 2 : i64, tpu.core_type = #tpu.core_type<tc>, window_params = [{transform_indices = @transform_0, window_bounds = array<i64: 1, 8, 16>}, {transform_indices = @transform_1, window_bounds = array<i64: 2, 8, 32>}, {transform_indices = @transform_2, window_bounds = array<i64: 2, 8, 32>}, {transform_indices = @transform_3, window_bounds = array<i64: 1, 1, 16>}, {transform_indices = @transform_4, window_bounds = array<i64: 1, 1, 1>}, {transform_indices = @transform_5, window_bounds = array<i64: 1, 1, 32>}, {transform_indices = @transform_6, window_bounds = array<i64: 1, 1, 1>}, {pipeline_mode = #tpu.pipeline_mode<synchronous>, transform_indices = @transform_7, window_bounds = array<i64: 16, 256>}, {pipeline_mode = #tpu.pipeline_mode<synchronous>, transform_indices = @transform_8, window_bounds = array<i64: 1, 256>}, {pipeline_mode = #tpu.pipeline_mode<synchronous>, transform_indices = @transform_9, window_bounds = array<i64: 32, 256>}, {pipeline_mode = #tpu.pipeline_mode<synchronous>, transform_indices = @transform_10, window_bounds = array<i64: 1, 256>}, {transform_indices = @transform_11, window_bounds = array<i64: 1, 1, 32>}, {transform_indices = @transform_12, window_bounds = array<i64: 1, 1, 1>}, {transform_indices = @transform_13, window_bounds = array<i64: 1, 1, 32>}, {transform_indices = @transform_14, window_bounds = array<i64: 1, 1, 1>}, {pipeline_mode = #tpu.pipeline_mode<synchronous>, transform_indices = @transform_15, window_bounds = array<i64: 32, 256>}, {pipeline_mode = #tpu.pipeline_mode<synchronous>, transform_indices = @transform_16, window_bounds = array<i64: 1, 256>}, {pipeline_mode = #tpu.pipeline_mode<synchronous>, transform_indices = @transform_17, window_bounds = array<i64: 32, 256>}, {pipeline_mode = #tpu.pipeline_mode<synchronous>, transform_indices = @transform_18, window_bounds = array<i64: 1, 256>}, {transform_indices = @transform_19, window_bounds = array<i64: 1, 1, 32>}, {transform_indices = @transform_20, window_bounds = array<i64: 1, 1, 1>}, {pipeline_mode = #tpu.pipeline_mode<synchronous>, transform_indices = @transform_21, window_bounds = array<i64: 32, 256>}, {pipeline_mode = #tpu.pipeline_mode<synchronous>, transform_indices = @transform_22, window_bounds = array<i64: 1, 256>}, {transform_indices = @transform_23, window_bounds = array<i64: 1, 8, 128>}, {transform_indices = @transform_24, window_bounds = array<i64: 2, 8, 32>}, {transform_indices = @transform_25, window_bounds = array<i64: 2, 8, 32>}]} {
    %c0_i32 = arith.constant 0 : i32
    %0 = arith.cmpi eq, %arg1, %c0_i32 : i32
    %1 = arith.extui %0 : i1 to i32
    %c0_i32_0 = arith.constant 0 : i32
    %2 = arith.cmpi ne, %1, %c0_i32_0 : i32
    scf.if %2 {
      %c0_122 = arith.constant 0 : index
      %c0_123 = arith.constant 0 : index
      %c0_124 = arith.constant 0 : index
      %240 = vector.load %arg3[%c0_122, %c0_123, %c0_124] : memref<2x8x32xf32, #tpu.memory_space<vmem>>, vector<2x8x32xf32>
      %c0_125 = arith.constant 0 : index
      %c0_126 = arith.constant 0 : index
      %c0_127 = arith.constant 0 : index
      %241 = vector.load %arg28[%c0_125, %c0_126, %c0_127] : memref<2x8x32xf32, #tpu.memory_space<vmem>>, vector<2x8x32xf32>
      tpu.vector_store %arg28[%c0_125, %c0_126, %c0_127], %240 {strides = array<i32>} : memref<2x8x32xf32, #tpu.memory_space<vmem>>, vector<2x8x32xf32>,
      %c0_128 = arith.constant 0 : index
      %c0_129 = arith.constant 0 : index
      %c0_130 = arith.constant 0 : index
      %242 = vector.load %arg4[%c0_128, %c0_129, %c0_130] : memref<2x8x32xf32, #tpu.memory_space<vmem>>, vector<2x8x32xf32>
      %c0_131 = arith.constant 0 : index
      %c0_132 = arith.constant 0 : index
      %c0_133 = arith.constant 0 : index
      %243 = vector.load %arg29[%c0_131, %c0_132, %c0_133] : memref<2x8x32xf32, #tpu.memory_space<vmem>>, vector<2x8x32xf32>
      tpu.vector_store %arg29[%c0_131, %c0_132, %c0_133], %242 {strides = array<i32>} : memref<2x8x32xf32, #tpu.memory_space<vmem>>, vector<2x8x32xf32>,
    } else {
    }
    %c0 = arith.constant 0 : index
    %c0_1 = arith.constant 0 : index
    %c0_2 = arith.constant 0 : index
    %3 = vector.load %arg2[%c0, %c0_1, %c0_2] : memref<1x8x16xf32, #tpu.memory_space<vmem>>, vector<1x8x16xf32>
    %4 = vector.shape_cast %3 : vector<1x8x16xf32> to vector<8x16xf32>
    %c0_3 = arith.constant 0 : index
    %c0_4 = arith.constant 0 : index
    %c0_5 = arith.constant 0 : index
    %5 = vector.load %arg28[%c0_3, %c0_4, %c0_5] : memref<2x8x32xf32, #tpu.memory_space<vmem>>, vector<1x8x32xf32>
    %6 = vector.shape_cast %5 : vector<1x8x32xf32> to vector<8x32xf32>
    %c0_6 = arith.constant 0 : index
    %c0_7 = arith.constant 0 : index
    %c0_8 = arith.constant 0 : index
    %7 = vector.load %arg29[%c0_6, %c0_7, %c0_8] : memref<2x8x32xf32, #tpu.memory_space<vmem>>, vector<1x8x32xf32>
    %8 = vector.shape_cast %7 : vector<1x8x32xf32> to vector<8x32xf32>
    %9 = arith.truncf %4 : vector<8x16xf32> to vector<8x16xbf16>
    %c0_9 = arith.constant 0 : index
    %c0_10 = arith.constant 0 : index
    %10 = vector.load %arg9[%c0_9, %c0_10] : memref<16x256xbf16, #tpu.memory_space<vmem>>, vector<16x256xbf16>
    %cst = arith.constant dense<0.000000e+00> : vector<8x256xf32>
    %11 = tpu.matmul %9, %10, %cst {dimension_numbers = #tpu.dot_dimension_numbers<[1], [0], [0], [1], [0, 0, 1, 1], [], []>} : vector<8x16xbf16>, vector<16x256xbf16>, vector<8x256xf32> -> vector<8x256xf32>
    %c0_11 = arith.constant 0 : index
    %c0_12 = arith.constant 0 : index
    %12 = vector.load %arg10[%c0_11, %c0_12] : memref<1x256xf32, #tpu.memory_space<vmem>>, vector<1x256xf32>
    %13 = vector.broadcast %12 : vector<1x256xf32> to vector<8x256xf32>
    %14 = arith.addf %11, %13 : vector<8x256xf32>
    %15 = vector.extract_strided_slice %14 {offsets = [0, 0], sizes = [8, 128], strides = [1, 1]} : vector<8x256xf32> to vector<8x128xf32>
    %c0_13 = arith.constant 0 : index
    %c0_14 = arith.constant 0 : index
    %c0_15 = arith.constant 0 : index
    %16 = vector.load %arg5[%c0_13, %c0_14, %c0_15] : memref<1x1x16xf32, #tpu.memory_space<vmem>>, vector<1x1x16xf32>
    %17 = vector.shape_cast %16 : vector<1x1x16xf32> to vector<1x16xf32>
    %18 = vector.broadcast %17 : vector<1x16xf32> to vector<8x16xf32>
    %19 = arith.mulf %4, %18 : vector<8x16xf32>
    %cst_16 = arith.constant dense<0.000000e+00> : vector<8xf32>
    %20 = vector.multi_reduction <add>, %19, %cst_16 [1] : vector<8x16xf32> to vector<8xf32>
    %21 = vector.shape_cast %20 : vector<8xf32> to vector<8x1xf32>
    %c0_17 = arith.constant 0 : index
    %c0_18 = arith.constant 0 : index
    %c0_19 = arith.constant 0 : index
    %22 = vector.load %arg6[%c0_17, %c0_18, %c0_19] : memref<1x1x1xf32, #tpu.memory_space<vmem>>, vector<1x1x1xf32>
    %23 = vector.shape_cast %22 : vector<1x1x1xf32> to vector<1x1xf32>
    %24 = vector.broadcast %23 : vector<1x1xf32> to vector<8x1xf32>
    %25 = arith.addf %21, %24 : vector<8x1xf32>
    %cst_20 = arith.constant 5.000000e-01 : f32
    %26 = vector.broadcast %cst_20 : f32 to vector<8x1xf32>
    %27 = arith.mulf %26, %25 : vector<8x1xf32>
    %28 = math.tanh %27 : vector<8x1xf32>
    %cst_21 = arith.constant 1.000000e+00 : f32
    %29 = vector.broadcast %cst_21 : f32 to vector<8x1xf32>
    %30 = arith.addf %28, %29 : vector<8x1xf32>
    %cst_22 = arith.constant 5.000000e-01 : f32
    %31 = vector.broadcast %cst_22 : f32 to vector<8x1xf32>
    %32 = arith.mulf %31, %30 : vector<8x1xf32>
    %33 = vector.extract_strided_slice %14 {offsets = [0, 128], sizes = [8, 128], strides = [1, 1]} : vector<8x256xf32> to vector<8x128xf32>
    %34 = arith.subf %33, %15 : vector<8x128xf32>
    %35 = vector.broadcast %32 : vector<8x1xf32> to vector<8x128xf32>
    %36 = arith.mulf %35, %34 : vector<8x128xf32>
    %37 = arith.addf %15, %36 : vector<8x128xf32>
    %38 = arith.truncf %6 : vector<8x32xf32> to vector<8x32xbf16>
    %c0_23 = arith.constant 0 : index
    %c0_24 = arith.constant 0 : index
    %39 = vector.load %arg11[%c0_23, %c0_24] : memref<32x256xbf16, #tpu.memory_space<vmem>>, vector<32x256xbf16>
    %cst_25 = arith.constant dense<0.000000e+00> : vector<8x256xf32>
    %40 = tpu.matmul %38, %39, %cst_25 {dimension_numbers = #tpu.dot_dimension_numbers<[1], [0], [0], [1], [0, 0, 1, 1], [], []>} : vector<8x32xbf16>, vector<32x256xbf16>, vector<8x256xf32> -> vector<8x256xf32>
    %c0_26 = arith.constant 0 : index
    %c0_27 = arith.constant 0 : index
    %41 = vector.load %arg12[%c0_26, %c0_27] : memref<1x256xf32, #tpu.memory_space<vmem>>, vector<1x256xf32>
    %42 = vector.broadcast %41 : vector<1x256xf32> to vector<8x256xf32>
    %43 = arith.addf %40, %42 : vector<8x256xf32>
    %44 = vector.extract_strided_slice %43 {offsets = [0, 0], sizes = [8, 128], strides = [1, 1]} : vector<8x256xf32> to vector<8x128xf32>
    %c0_28 = arith.constant 0 : index
    %c0_29 = arith.constant 0 : index
    %c0_30 = arith.constant 0 : index
    %45 = vector.load %arg7[%c0_28, %c0_29, %c0_30] : memref<1x1x32xf32, #tpu.memory_space<vmem>>, vector<1x1x32xf32>
    %46 = vector.shape_cast %45 : vector<1x1x32xf32> to vector<1x32xf32>
    %47 = vector.broadcast %46 : vector<1x32xf32> to vector<8x32xf32>
    %48 = arith.mulf %6, %47 : vector<8x32xf32>
    %cst_31 = arith.constant dense<0.000000e+00> : vector<8xf32>
    %49 = vector.multi_reduction <add>, %48, %cst_31 [1] : vector<8x32xf32> to vector<8xf32>
    %50 = vector.shape_cast %49 : vector<8xf32> to vector<8x1xf32>
    %c0_32 = arith.constant 0 : index
    %c0_33 = arith.constant 0 : index
    %c0_34 = arith.constant 0 : index
    %51 = vector.load %arg8[%c0_32, %c0_33, %c0_34] : memref<1x1x1xf32, #tpu.memory_space<vmem>>, vector<1x1x1xf32>
    %52 = vector.shape_cast %51 : vector<1x1x1xf32> to vector<1x1xf32>
    %53 = vector.broadcast %52 : vector<1x1xf32> to vector<8x1xf32>
    %54 = arith.addf %50, %53 : vector<8x1xf32>
    %cst_35 = arith.constant 5.000000e-01 : f32
    %55 = vector.broadcast %cst_35 : f32 to vector<8x1xf32>
    %56 = arith.mulf %55, %54 : vector<8x1xf32>
    %57 = math.tanh %56 : vector<8x1xf32>
    %cst_36 = arith.constant 1.000000e+00 : f32
    %58 = vector.broadcast %cst_36 : f32 to vector<8x1xf32>
    %59 = arith.addf %57, %58 : vector<8x1xf32>
    %cst_37 = arith.constant 5.000000e-01 : f32
    %60 = vector.broadcast %cst_37 : f32 to vector<8x1xf32>
    %61 = arith.mulf %60, %59 : vector<8x1xf32>
    %62 = vector.extract_strided_slice %43 {offsets = [0, 128], sizes = [8, 128], strides = [1, 1]} : vector<8x256xf32> to vector<8x128xf32>
    %63 = arith.subf %62, %44 : vector<8x128xf32>
    %64 = vector.broadcast %61 : vector<8x1xf32> to vector<8x128xf32>
    %65 = arith.mulf %64, %63 : vector<8x128xf32>
    %66 = arith.addf %44, %65 : vector<8x128xf32>
    %67 = arith.addf %37, %66 : vector<8x128xf32>
    %68 = vector.extract_strided_slice %67 {offsets = [0, 0], sizes = [8, 32], strides = [1, 1]} : vector<8x128xf32> to vector<8x32xf32>
    %cst_38 = arith.constant 5.000000e-01 : f32
    %69 = vector.broadcast %cst_38 : f32 to vector<8x32xf32>
    %70 = arith.mulf %69, %68 : vector<8x32xf32>
    %71 = math.tanh %70 : vector<8x32xf32>
    %cst_39 = arith.constant 1.000000e+00 : f32
    %72 = vector.broadcast %cst_39 : f32 to vector<8x32xf32>
    %73 = arith.addf %71, %72 : vector<8x32xf32>
    %cst_40 = arith.constant 5.000000e-01 : f32
    %74 = vector.broadcast %cst_40 : f32 to vector<8x32xf32>
    %75 = arith.mulf %74, %73 : vector<8x32xf32>
    %76 = vector.extract_strided_slice %67 {offsets = [0, 32], sizes = [8, 32], strides = [1, 1]} : vector<8x128xf32> to vector<8x32xf32>
    %cst_41 = arith.constant 5.000000e-01 : f32
    %77 = vector.broadcast %cst_41 : f32 to vector<8x32xf32>
    %78 = arith.mulf %77, %76 : vector<8x32xf32>
    %79 = math.tanh %78 : vector<8x32xf32>
    %cst_42 = arith.constant 1.000000e+00 : f32
    %80 = vector.broadcast %cst_42 : f32 to vector<8x32xf32>
    %81 = arith.addf %79, %80 : vector<8x32xf32>
    %cst_43 = arith.constant 5.000000e-01 : f32
    %82 = vector.broadcast %cst_43 : f32 to vector<8x32xf32>
    %83 = arith.mulf %82, %81 : vector<8x32xf32>
    %84 = vector.extract_strided_slice %67 {offsets = [0, 64], sizes = [8, 32], strides = [1, 1]} : vector<8x128xf32> to vector<8x32xf32>
    %85 = math.tanh %84 : vector<8x32xf32>
    %86 = vector.extract_strided_slice %67 {offsets = [0, 96], sizes = [8, 32], strides = [1, 1]} : vector<8x128xf32> to vector<8x32xf32>
    %cst_44 = arith.constant 5.000000e-01 : f32
    %87 = vector.broadcast %cst_44 : f32 to vector<8x32xf32>
    %88 = arith.mulf %87, %86 : vector<8x32xf32>
    %89 = math.tanh %88 : vector<8x32xf32>
    %cst_45 = arith.constant 1.000000e+00 : f32
    %90 = vector.broadcast %cst_45 : f32 to vector<8x32xf32>
    %91 = arith.addf %89, %90 : vector<8x32xf32>
    %cst_46 = arith.constant 5.000000e-01 : f32
    %92 = vector.broadcast %cst_46 : f32 to vector<8x32xf32>
    %93 = arith.mulf %92, %91 : vector<8x32xf32>
    %94 = arith.mulf %83, %8 : vector<8x32xf32>
    %95 = arith.mulf %75, %85 : vector<8x32xf32>
    %96 = arith.addf %94, %95 : vector<8x32xf32>
    %97 = math.tanh %96 : vector<8x32xf32>
    %98 = arith.mulf %93, %97 : vector<8x32xf32>
    %c0_47 = arith.constant 0 : index
    %c0_48 = arith.constant 0 : index
    %c0_49 = arith.constant 0 : index
    %99 = vector.load %arg28[%c0_47, %c0_48, %c0_49] : memref<2x8x32xf32, #tpu.memory_space<vmem>>, vector<1x8x32xf32>
    %100 = vector.shape_cast %99 : vector<1x8x32xf32> to vector<8x32xf32>
    %101 = vector.shape_cast %98 : vector<8x32xf32> to vector<1x8x32xf32>
    tpu.vector_store %arg28[%c0_47, %c0_48, %c0_49], %101 {strides = array<i32>} : memref<2x8x32xf32, #tpu.memory_space<vmem>>, vector<1x8x32xf32>,
    %c0_50 = arith.constant 0 : index
    %c0_51 = arith.constant 0 : index
    %c0_52 = arith.constant 0 : index
    %102 = vector.load %arg29[%c0_50, %c0_51, %c0_52] : memref<2x8x32xf32, #tpu.memory_space<vmem>>, vector<1x8x32xf32>
    %103 = vector.shape_cast %102 : vector<1x8x32xf32> to vector<8x32xf32>
    %104 = vector.shape_cast %96 : vector<8x32xf32> to vector<1x8x32xf32>
    tpu.vector_store %arg29[%c0_50, %c0_51, %c0_52], %104 {strides = array<i32>} : memref<2x8x32xf32, #tpu.memory_space<vmem>>, vector<1x8x32xf32>,
    %c1 = arith.constant 1 : index
    %c0_53 = arith.constant 0 : index
    %c0_54 = arith.constant 0 : index
    %105 = vector.load %arg28[%c1, %c0_53, %c0_54] : memref<2x8x32xf32, #tpu.memory_space<vmem>>, vector<1x8x32xf32>
    %106 = vector.shape_cast %105 : vector<1x8x32xf32> to vector<8x32xf32>
    %c1_55 = arith.constant 1 : index
    %c0_56 = arith.constant 0 : index
    %c0_57 = arith.constant 0 : index
    %107 = vector.load %arg29[%c1_55, %c0_56, %c0_57] : memref<2x8x32xf32, #tpu.memory_space<vmem>>, vector<1x8x32xf32>
    %108 = vector.shape_cast %107 : vector<1x8x32xf32> to vector<8x32xf32>
    %109 = arith.truncf %98 : vector<8x32xf32> to vector<8x32xbf16>
    %c0_58 = arith.constant 0 : index
    %c0_59 = arith.constant 0 : index
    %110 = vector.load %arg17[%c0_58, %c0_59] : memref<32x256xbf16, #tpu.memory_space<vmem>>, vector<32x256xbf16>
    %cst_60 = arith.constant dense<0.000000e+00> : vector<8x256xf32>
    %111 = tpu.matmul %109, %110, %cst_60 {dimension_numbers = #tpu.dot_dimension_numbers<[1], [0], [0], [1], [0, 0, 1, 1], [], []>} : vector<8x32xbf16>, vector<32x256xbf16>, vector<8x256xf32> -> vector<8x256xf32>
    %c0_61 = arith.constant 0 : index
    %c0_62 = arith.constant 0 : index
    %112 = vector.load %arg18[%c0_61, %c0_62] : memref<1x256xf32, #tpu.memory_space<vmem>>, vector<1x256xf32>
    %113 = vector.broadcast %112 : vector<1x256xf32> to vector<8x256xf32>
    %114 = arith.addf %111, %113 : vector<8x256xf32>
    %115 = vector.extract_strided_slice %114 {offsets = [0, 0], sizes = [8, 128], strides = [1, 1]} : vector<8x256xf32> to vector<8x128xf32>
    %c0_63 = arith.constant 0 : index
    %c0_64 = arith.constant 0 : index
    %c0_65 = arith.constant 0 : index
    %116 = vector.load %arg13[%c0_63, %c0_64, %c0_65] : memref<1x1x32xf32, #tpu.memory_space<vmem>>, vector<1x1x32xf32>
    %117 = vector.shape_cast %116 : vector<1x1x32xf32> to vector<1x32xf32>
    %118 = vector.broadcast %117 : vector<1x32xf32> to vector<8x32xf32>
    %119 = arith.mulf %98, %118 : vector<8x32xf32>
    %cst_66 = arith.constant dense<0.000000e+00> : vector<8xf32>
    %120 = vector.multi_reduction <add>, %119, %cst_66 [1] : vector<8x32xf32> to vector<8xf32>
    %121 = vector.shape_cast %120 : vector<8xf32> to vector<8x1xf32>
    %c0_67 = arith.constant 0 : index
    %c0_68 = arith.constant 0 : index
    %c0_69 = arith.constant 0 : index
    %122 = vector.load %arg14[%c0_67, %c0_68, %c0_69] : memref<1x1x1xf32, #tpu.memory_space<vmem>>, vector<1x1x1xf32>
    %123 = vector.shape_cast %122 : vector<1x1x1xf32> to vector<1x1xf32>
    %124 = vector.broadcast %123 : vector<1x1xf32> to vector<8x1xf32>
    %125 = arith.addf %121, %124 : vector<8x1xf32>
    %cst_70 = arith.constant 5.000000e-01 : f32
    %126 = vector.broadcast %cst_70 : f32 to vector<8x1xf32>
    %127 = arith.mulf %126, %125 : vector<8x1xf32>
    %128 = math.tanh %127 : vector<8x1xf32>
    %cst_71 = arith.constant 1.000000e+00 : f32
    %129 = vector.broadcast %cst_71 : f32 to vector<8x1xf32>
    %130 = arith.addf %128, %129 : vector<8x1xf32>
    %cst_72 = arith.constant 5.000000e-01 : f32
    %131 = vector.broadcast %cst_72 : f32 to vector<8x1xf32>
    %132 = arith.mulf %131, %130 : vector<8x1xf32>
    %133 = vector.extract_strided_slice %114 {offsets = [0, 128], sizes = [8, 128], strides = [1, 1]} : vector<8x256xf32> to vector<8x128xf32>
    %134 = arith.subf %133, %115 : vector<8x128xf32>
    %135 = vector.broadcast %132 : vector<8x1xf32> to vector<8x128xf32>
    %136 = arith.mulf %135, %134 : vector<8x128xf32>
    %137 = arith.addf %115, %136 : vector<8x128xf32>
    %138 = arith.truncf %106 : vector<8x32xf32> to vector<8x32xbf16>
    %c0_73 = arith.constant 0 : index
    %c0_74 = arith.constant 0 : index
    %139 = vector.load %arg19[%c0_73, %c0_74] : memref<32x256xbf16, #tpu.memory_space<vmem>>, vector<32x256xbf16>
    %cst_75 = arith.constant dense<0.000000e+00> : vector<8x256xf32>
    %140 = tpu.matmul %138, %139, %cst_75 {dimension_numbers = #tpu.dot_dimension_numbers<[1], [0], [0], [1], [0, 0, 1, 1], [], []>} : vector<8x32xbf16>, vector<32x256xbf16>, vector<8x256xf32> -> vector<8x256xf32>
    %c0_76 = arith.constant 0 : index
    %c0_77 = arith.constant 0 : index
    %141 = vector.load %arg20[%c0_76, %c0_77] : memref<1x256xf32, #tpu.memory_space<vmem>>, vector<1x256xf32>
    %142 = vector.broadcast %141 : vector<1x256xf32> to vector<8x256xf32>
    %143 = arith.addf %140, %142 : vector<8x256xf32>
    %144 = vector.extract_strided_slice %143 {offsets = [0, 0], sizes = [8, 128], strides = [1, 1]} : vector<8x256xf32> to vector<8x128xf32>
    %c0_78 = arith.constant 0 : index
    %c0_79 = arith.constant 0 : index
    %c0_80 = arith.constant 0 : index
    %145 = vector.load %arg15[%c0_78, %c0_79, %c0_80] : memref<1x1x32xf32, #tpu.memory_space<vmem>>, vector<1x1x32xf32>
    %146 = vector.shape_cast %145 : vector<1x1x32xf32> to vector<1x32xf32>
    %147 = vector.broadcast %146 : vector<1x32xf32> to vector<8x32xf32>
    %148 = arith.mulf %106, %147 : vector<8x32xf32>
    %cst_81 = arith.constant dense<0.000000e+00> : vector<8xf32>
    %149 = vector.multi_reduction <add>, %148, %cst_81 [1] : vector<8x32xf32> to vector<8xf32>
    %150 = vector.shape_cast %149 : vector<8xf32> to vector<8x1xf32>
    %c0_82 = arith.constant 0 : index
    %c0_83 = arith.constant 0 : index
    %c0_84 = arith.constant 0 : index
    %151 = vector.load %arg16[%c0_82, %c0_83, %c0_84] : memref<1x1x1xf32, #tpu.memory_space<vmem>>, vector<1x1x1xf32>
    %152 = vector.shape_cast %151 : vector<1x1x1xf32> to vector<1x1xf32>
    %153 = vector.broadcast %152 : vector<1x1xf32> to vector<8x1xf32>
    %154 = arith.addf %150, %153 : vector<8x1xf32>
    %cst_85 = arith.constant 5.000000e-01 : f32
    %155 = vector.broadcast %cst_85 : f32 to vector<8x1xf32>
    %156 = arith.mulf %155, %154 : vector<8x1xf32>
    %157 = math.tanh %156 : vector<8x1xf32>
    %cst_86 = arith.constant 1.000000e+00 : f32
    %158 = vector.broadcast %cst_86 : f32 to vector<8x1xf32>
    %159 = arith.addf %157, %158 : vector<8x1xf32>
    %cst_87 = arith.constant 5.000000e-01 : f32
    %160 = vector.broadcast %cst_87 : f32 to vector<8x1xf32>
    %161 = arith.mulf %160, %159 : vector<8x1xf32>
    %162 = vector.extract_strided_slice %143 {offsets = [0, 128], sizes = [8, 128], strides = [1, 1]} : vector<8x256xf32> to vector<8x128xf32>
    %163 = arith.subf %162, %144 : vector<8x128xf32>
    %164 = vector.broadcast %161 : vector<8x1xf32> to vector<8x128xf32>
    %165 = arith.mulf %164, %163 : vector<8x128xf32>
    %166 = arith.addf %144, %165 : vector<8x128xf32>
    %167 = arith.addf %137, %166 : vector<8x128xf32>
    %168 = vector.extract_strided_slice %167 {offsets = [0, 0], sizes = [8, 32], strides = [1, 1]} : vector<8x128xf32> to vector<8x32xf32>
    %cst_88 = arith.constant 5.000000e-01 : f32
    %169 = vector.broadcast %cst_88 : f32 to vector<8x32xf32>
    %170 = arith.mulf %169, %168 : vector<8x32xf32>
    %171 = math.tanh %170 : vector<8x32xf32>
    %cst_89 = arith.constant 1.000000e+00 : f32
    %172 = vector.broadcast %cst_89 : f32 to vector<8x32xf32>
    %173 = arith.addf %171, %172 : vector<8x32xf32>
    %cst_90 = arith.constant 5.000000e-01 : f32
    %174 = vector.broadcast %cst_90 : f32 to vector<8x32xf32>
    %175 = arith.mulf %174, %173 : vector<8x32xf32>
    %176 = vector.extract_strided_slice %167 {offsets = [0, 32], sizes = [8, 32], strides = [1, 1]} : vector<8x128xf32> to vector<8x32xf32>
    %cst_91 = arith.constant 5.000000e-01 : f32
    %177 = vector.broadcast %cst_91 : f32 to vector<8x32xf32>
    %178 = arith.mulf %177, %176 : vector<8x32xf32>
    %179 = math.tanh %178 : vector<8x32xf32>
    %cst_92 = arith.constant 1.000000e+00 : f32
    %180 = vector.broadcast %cst_92 : f32 to vector<8x32xf32>
    %181 = arith.addf %179, %180 : vector<8x32xf32>
    %cst_93 = arith.constant 5.000000e-01 : f32
    %182 = vector.broadcast %cst_93 : f32 to vector<8x32xf32>
    %183 = arith.mulf %182, %181 : vector<8x32xf32>
    %184 = vector.extract_strided_slice %167 {offsets = [0, 64], sizes = [8, 32], strides = [1, 1]} : vector<8x128xf32> to vector<8x32xf32>
    %185 = math.tanh %184 : vector<8x32xf32>
    %186 = vector.extract_strided_slice %167 {offsets = [0, 96], sizes = [8, 32], strides = [1, 1]} : vector<8x128xf32> to vector<8x32xf32>
    %cst_94 = arith.constant 5.000000e-01 : f32
    %187 = vector.broadcast %cst_94 : f32 to vector<8x32xf32>
    %188 = arith.mulf %187, %186 : vector<8x32xf32>
    %189 = math.tanh %188 : vector<8x32xf32>
    %cst_95 = arith.constant 1.000000e+00 : f32
    %190 = vector.broadcast %cst_95 : f32 to vector<8x32xf32>
    %191 = arith.addf %189, %190 : vector<8x32xf32>
    %cst_96 = arith.constant 5.000000e-01 : f32
    %192 = vector.broadcast %cst_96 : f32 to vector<8x32xf32>
    %193 = arith.mulf %192, %191 : vector<8x32xf32>
    %194 = arith.mulf %183, %108 : vector<8x32xf32>
    %195 = arith.mulf %175, %185 : vector<8x32xf32>
    %196 = arith.addf %194, %195 : vector<8x32xf32>
    %197 = math.tanh %196 : vector<8x32xf32>
    %198 = arith.mulf %193, %197 : vector<8x32xf32>
    %c1_97 = arith.constant 1 : index
    %c0_98 = arith.constant 0 : index
    %c0_99 = arith.constant 0 : index
    %199 = vector.load %arg28[%c1_97, %c0_98, %c0_99] : memref<2x8x32xf32, #tpu.memory_space<vmem>>, vector<1x8x32xf32>
    %200 = vector.shape_cast %199 : vector<1x8x32xf32> to vector<8x32xf32>
    %201 = vector.shape_cast %198 : vector<8x32xf32> to vector<1x8x32xf32>
    tpu.vector_store %arg28[%c1_97, %c0_98, %c0_99], %201 {strides = array<i32>} : memref<2x8x32xf32, #tpu.memory_space<vmem>>, vector<1x8x32xf32>,
    %c1_100 = arith.constant 1 : index
    %c0_101 = arith.constant 0 : index
    %c0_102 = arith.constant 0 : index
    %202 = vector.load %arg29[%c1_100, %c0_101, %c0_102] : memref<2x8x32xf32, #tpu.memory_space<vmem>>, vector<1x8x32xf32>
    %203 = vector.shape_cast %202 : vector<1x8x32xf32> to vector<8x32xf32>
    %204 = vector.shape_cast %196 : vector<8x32xf32> to vector<1x8x32xf32>
    tpu.vector_store %arg29[%c1_100, %c0_101, %c0_102], %204 {strides = array<i32>} : memref<2x8x32xf32, #tpu.memory_space<vmem>>, vector<1x8x32xf32>,
    %205 = arith.truncf %198 : vector<8x32xf32> to vector<8x32xbf16>
    %c0_103 = arith.constant 0 : index
    %c0_104 = arith.constant 0 : index
    %206 = vector.load %arg23[%c0_103, %c0_104] : memref<32x256xbf16, #tpu.memory_space<vmem>>, vector<32x256xbf16>
    %cst_105 = arith.constant dense<0.000000e+00> : vector<8x256xf32>
    %207 = tpu.matmul %205, %206, %cst_105 {dimension_numbers = #tpu.dot_dimension_numbers<[1], [0], [0], [1], [0, 0, 1, 1], [], []>} : vector<8x32xbf16>, vector<32x256xbf16>, vector<8x256xf32> -> vector<8x256xf32>
    %c0_106 = arith.constant 0 : index
    %c0_107 = arith.constant 0 : index
    %208 = vector.load %arg24[%c0_106, %c0_107] : memref<1x256xf32, #tpu.memory_space<vmem>>, vector<1x256xf32>
    %209 = vector.broadcast %208 : vector<1x256xf32> to vector<8x256xf32>
    %210 = arith.addf %207, %209 : vector<8x256xf32>
    %211 = vector.extract_strided_slice %210 {offsets = [0, 0], sizes = [8, 128], strides = [1, 1]} : vector<8x256xf32> to vector<8x128xf32>
    %c0_108 = arith.constant 0 : index
    %c0_109 = arith.constant 0 : index
    %c0_110 = arith.constant 0 : index
    %212 = vector.load %arg21[%c0_108, %c0_109, %c0_110] : memref<1x1x32xf32, #tpu.memory_space<vmem>>, vector<1x1x32xf32>
    %213 = vector.shape_cast %212 : vector<1x1x32xf32> to vector<1x32xf32>
    %214 = vector.broadcast %213 : vector<1x32xf32> to vector<8x32xf32>
    %215 = arith.mulf %198, %214 : vector<8x32xf32>
    %cst_111 = arith.constant dense<0.000000e+00> : vector<8xf32>
    %216 = vector.multi_reduction <add>, %215, %cst_111 [1] : vector<8x32xf32> to vector<8xf32>
    %217 = vector.shape_cast %216 : vector<8xf32> to vector<8x1xf32>
    %c0_112 = arith.constant 0 : index
    %c0_113 = arith.constant 0 : index
    %c0_114 = arith.constant 0 : index
    %218 = vector.load %arg22[%c0_112, %c0_113, %c0_114] : memref<1x1x1xf32, #tpu.memory_space<vmem>>, vector<1x1x1xf32>
    %219 = vector.shape_cast %218 : vector<1x1x1xf32> to vector<1x1xf32>
    %220 = vector.broadcast %219 : vector<1x1xf32> to vector<8x1xf32>
    %221 = arith.addf %217, %220 : vector<8x1xf32>
    %cst_115 = arith.constant 5.000000e-01 : f32
    %222 = vector.broadcast %cst_115 : f32 to vector<8x1xf32>
    %223 = arith.mulf %222, %221 : vector<8x1xf32>
    %224 = math.tanh %223 : vector<8x1xf32>
    %cst_116 = arith.constant 1.000000e+00 : f32
    %225 = vector.broadcast %cst_116 : f32 to vector<8x1xf32>
    %226 = arith.addf %224, %225 : vector<8x1xf32>
    %cst_117 = arith.constant 5.000000e-01 : f32
    %227 = vector.broadcast %cst_117 : f32 to vector<8x1xf32>
    %228 = arith.mulf %227, %226 : vector<8x1xf32>
    %229 = vector.extract_strided_slice %210 {offsets = [0, 128], sizes = [8, 128], strides = [1, 1]} : vector<8x256xf32> to vector<8x128xf32>
    %230 = arith.subf %229, %211 : vector<8x128xf32>
    %231 = vector.broadcast %228 : vector<8x1xf32> to vector<8x128xf32>
    %232 = arith.mulf %231, %230 : vector<8x128xf32>
    %233 = arith.addf %211, %232 : vector<8x128xf32>
    %c0_118 = arith.constant 0 : index
    %c0_119 = arith.constant 0 : index
    %c0_120 = arith.constant 0 : index
    %234 = vector.load %arg25[%c0_118, %c0_119, %c0_120] : memref<1x8x128xf32, #tpu.memory_space<vmem>>, vector<1x8x128xf32>
    %235 = vector.shape_cast %234 : vector<1x8x128xf32> to vector<8x128xf32>
    %236 = vector.shape_cast %233 : vector<8x128xf32> to vector<1x8x128xf32>
    tpu.vector_store %arg25[%c0_118, %c0_119, %c0_120], %236 {strides = array<i32>} : memref<1x8x128xf32, #tpu.memory_space<vmem>>, vector<1x8x128xf32>,
    %c7_i32 = arith.constant 7 : i32
    %237 = arith.cmpi eq, %arg1, %c7_i32 : i32
    %238 = arith.extui %237 : i1 to i32
    %c0_i32_121 = arith.constant 0 : i32
    %239 = arith.cmpi ne, %238, %c0_i32_121 : i32
    scf.if %239 {
      %c0_122 = arith.constant 0 : index
      %c0_123 = arith.constant 0 : index
      %c0_124 = arith.constant 0 : index
      %240 = vector.load %arg28[%c0_122, %c0_123, %c0_124] : memref<2x8x32xf32, #tpu.memory_space<vmem>>, vector<2x8x32xf32>
      %c0_125 = arith.constant 0 : index
      %c0_126 = arith.constant 0 : index
      %c0_127 = arith.constant 0 : index
      %241 = vector.load %arg26[%c0_125, %c0_126, %c0_127] : memref<2x8x32xf32, #tpu.memory_space<vmem>>, vector<2x8x32xf32>
      tpu.vector_store %arg26[%c0_125, %c0_126, %c0_127], %240 {strides = array<i32>} : memref<2x8x32xf32, #tpu.memory_space<vmem>>, vector<2x8x32xf32>,
      %c0_128 = arith.constant 0 : index
      %c0_129 = arith.constant 0 : index
      %c0_130 = arith.constant 0 : index
      %242 = vector.load %arg29[%c0_128, %c0_129, %c0_130] : memref<2x8x32xf32, #tpu.memory_space<vmem>>, vector<2x8x32xf32>
      %c0_131 = arith.constant 0 : index
      %c0_132 = arith.constant 0 : index
      %c0_133 = arith.constant 0 : index
      %243 = vector.load %arg27[%c0_131, %c0_132, %c0_133] : memref<2x8x32xf32, #tpu.memory_space<vmem>>, vector<2x8x32xf32>
      tpu.vector_store %arg27[%c0_131, %c0_132, %c0_133], %242 {strides = array<i32>} : memref<2x8x32xf32, #tpu.memory_space<vmem>>, vector<2x8x32xf32>,
    } else {
    }
    return
  }
  func.func @transform_0(%arg0: i32, %arg1: i32) -> (i32, i32, i32) {
    %c0_i32 = arith.constant 0 : i32
    %c0_i32_0 = arith.constant 0 : i32
    return %arg1, %arg0, %c0_i32 : i32, i32, i32
  }
  func.func @transform_1(%arg0: i32, %arg1: i32) -> (i32, i32, i32) {
    %c0_i32 = arith.constant 0 : i32
    %c0_i32_0 = arith.constant 0 : i32
    %c0_i32_1 = arith.constant 0 : i32
    return %c0_i32, %arg0, %c0_i32_0 : i32, i32, i32
  }
  func.func @transform_2(%arg0: i32, %arg1: i32) -> (i32, i32, i32) {
    %c0_i32 = arith.constant 0 : i32
    %c0_i32_0 = arith.constant 0 : i32
    %c0_i32_1 = arith.constant 0 : i32
    return %c0_i32, %arg0, %c0_i32_0 : i32, i32, i32
  }
  func.func @transform_3(%arg0: i32, %arg1: i32) -> (i32, i32, i32) {
    %c0_i32 = arith.constant 0 : i32
    %c0_i32_0 = arith.constant 0 : i32
    %c0_i32_1 = arith.constant 0 : i32
    return %arg1, %c0_i32, %c0_i32_0 : i32, i32, i32
  }
  func.func @transform_4(%arg0: i32, %arg1: i32) -> (i32, i32, i32) {
    %c0_i32 = arith.constant 0 : i32
    %c0_i32_0 = arith.constant 0 : i32
    %c0_i32_1 = arith.constant 0 : i32
    return %arg1, %c0_i32, %c0_i32_0 : i32, i32, i32
  }
  func.func @transform_5(%arg0: i32, %arg1: i32) -> (i32, i32, i32) {
    %c0_i32 = arith.constant 0 : i32
    %c0_i32_0 = arith.constant 0 : i32
    %c0_i32_1 = arith.constant 0 : i32
    return %arg1, %c0_i32, %c0_i32_0 : i32, i32, i32
  }
  func.func @transform_6(%arg0: i32, %arg1: i32) -> (i32, i32, i32) {
    %c0_i32 = arith.constant 0 : i32
    %c0_i32_0 = arith.constant 0 : i32
    %c0_i32_1 = arith.constant 0 : i32
    return %arg1, %c0_i32, %c0_i32_0 : i32, i32, i32
  }
  func.func @transform_7(%arg0: i32, %arg1: i32) -> (i32, i32) {
    %c0_i32 = arith.constant 0 : i32
    %c0_i32_0 = arith.constant 0 : i32
    %c0_i32_1 = arith.constant 0 : i32
    return %c0_i32, %c0_i32_0 : i32, i32
  }
  func.func @transform_8(%arg0: i32, %arg1: i32) -> (i32, i32) {
    %c0_i32 = arith.constant 0 : i32
    %c0_i32_0 = arith.constant 0 : i32
    %c0_i32_1 = arith.constant 0 : i32
    return %c0_i32, %c0_i32_0 : i32, i32
  }
  func.func @transform_9(%arg0: i32, %arg1: i32) -> (i32, i32) {
    %c0_i32 = arith.constant 0 : i32
    %c0_i32_0 = arith.constant 0 : i32
    %c0_i32_1 = arith.constant 0 : i32
    return %c0_i32, %c0_i32_0 : i32, i32
  }
  func.func @transform_10(%arg0: i32, %arg1: i32) -> (i32, i32) {
    %c0_i32 = arith.constant 0 : i32
    %c0_i32_0 = arith.constant 0 : i32
    %c0_i32_1 = arith.constant 0 : i32
    return %c0_i32, %c0_i32_0 : i32, i32
  }
  func.func @transform_11(%arg0: i32, %arg1: i32) -> (i32, i32, i32) {
    %c0_i32 = arith.constant 0 : i32
    %c0_i32_0 = arith.constant 0 : i32
    %c0_i32_1 = arith.constant 0 : i32
    return %arg1, %c0_i32, %c0_i32_0 : i32, i32, i32
  }
  func.func @transform_12(%arg0: i32, %arg1: i32) -> (i32, i32, i32) {
    %c0_i32 = arith.constant 0 : i32
    %c0_i32_0 = arith.constant 0 : i32
    %c0_i32_1 = arith.constant 0 : i32
    return %arg1, %c0_i32, %c0_i32_0 : i32, i32, i32
  }
  func.func @transform_13(%arg0: i32, %arg1: i32) -> (i32, i32, i32) {
    %c0_i32 = arith.constant 0 : i32
    %c0_i32_0 = arith.constant 0 : i32
    %c0_i32_1 = arith.constant 0 : i32
    return %arg1, %c0_i32, %c0_i32_0 : i32, i32, i32
  }
  func.func @transform_14(%arg0: i32, %arg1: i32) -> (i32, i32, i32) {
    %c0_i32 = arith.constant 0 : i32
    %c0_i32_0 = arith.constant 0 : i32
    %c0_i32_1 = arith.constant 0 : i32
    return %arg1, %c0_i32, %c0_i32_0 : i32, i32, i32
  }
  func.func @transform_15(%arg0: i32, %arg1: i32) -> (i32, i32) {
    %c0_i32 = arith.constant 0 : i32
    %c0_i32_0 = arith.constant 0 : i32
    %c0_i32_1 = arith.constant 0 : i32
    return %c0_i32, %c0_i32_0 : i32, i32
  }
  func.func @transform_16(%arg0: i32, %arg1: i32) -> (i32, i32) {
    %c0_i32 = arith.constant 0 : i32
    %c0_i32_0 = arith.constant 0 : i32
    %c0_i32_1 = arith.constant 0 : i32
    return %c0_i32, %c0_i32_0 : i32, i32
  }
  func.func @transform_17(%arg0: i32, %arg1: i32) -> (i32, i32) {
    %c0_i32 = arith.constant 0 : i32
    %c0_i32_0 = arith.constant 0 : i32
    %c0_i32_1 = arith.constant 0 : i32
    return %c0_i32, %c0_i32_0 : i32, i32
  }
  func.func @transform_18(%arg0: i32, %arg1: i32) -> (i32, i32) {
    %c0_i32 = arith.constant 0 : i32
    %c0_i32_0 = arith.constant 0 : i32
    %c0_i32_1 = arith.constant 0 : i32
    return %c0_i32, %c0_i32_0 : i32, i32
  }
  func.func @transform_19(%arg0: i32, %arg1: i32) -> (i32, i32, i32) {
    %c0_i32 = arith.constant 0 : i32
    %c0_i32_0 = arith.constant 0 : i32
    %c0_i32_1 = arith.constant 0 : i32
    return %arg1, %c0_i32, %c0_i32_0 : i32, i32, i32
  }
  func.func @transform_20(%arg0: i32, %arg1: i32) -> (i32, i32, i32) {
    %c0_i32 = arith.constant 0 : i32
    %c0_i32_0 = arith.constant 0 : i32
    %c0_i32_1 = arith.constant 0 : i32
    return %arg1, %c0_i32, %c0_i32_0 : i32, i32, i32
  }
  func.func @transform_21(%arg0: i32, %arg1: i32) -> (i32, i32) {
    %c0_i32 = arith.constant 0 : i32
    %c0_i32_0 = arith.constant 0 : i32
    %c0_i32_1 = arith.constant 0 : i32
    return %c0_i32, %c0_i32_0 : i32, i32
  }
  func.func @transform_22(%arg0: i32, %arg1: i32) -> (i32, i32) {
    %c0_i32 = arith.constant 0 : i32
    %c0_i32_0 = arith.constant 0 : i32
    %c0_i32_1 = arith.constant 0 : i32
    return %c0_i32, %c0_i32_0 : i32, i32
  }
  func.func @transform_23(%arg0: i32, %arg1: i32) -> (i32, i32, i32) {
    %c0_i32 = arith.constant 0 : i32
    %c0_i32_0 = arith.constant 0 : i32
    return %arg1, %arg0, %c0_i32 : i32, i32, i32
  }
  func.func @transform_24(%arg0: i32, %arg1: i32) -> (i32, i32, i32) {
    %c0_i32 = arith.constant 0 : i32
    %c0_i32_0 = arith.constant 0 : i32
    %c0_i32_1 = arith.constant 0 : i32
    return %c0_i32, %arg0, %c0_i32_0 : i32, i32, i32
  }
  func.func @transform_25(%arg0: i32, %arg1: i32) -> (i32, i32, i32) {
    %c0_i32 = arith.constant 0 : i32
    %c0_i32_0 = arith.constant 0 : i32
    %c0_i32_1 = arith.constant 0 : i32
    return %c0_i32, %arg0, %c0_i32_0 : i32, i32, i32
  }
}

</mosaic_0001>

<bundles_post_ra>
// kernel: tpu_custom_call.1
= control target key start
LH: loop header
LB: loop body
LE: loop exit
PB: predicated region body
PF: predicated region fallthrough
CT: control target
= control target key end

     0   :  { %s3566_s0 = inlined_call_operand.hbm [shape: f32[8,8,16], index: 0, kind: input, shape index: {}]   ;;  %s3567_s1 = inlined_call_operand.vmem [shape: f32[2,8,32], index: 1, kind: input, shape index: {}]   ;;  %s3568_s2 = inlined_call_operand.vmem [shape: f32[2,8,32], index: 2, kind: input, shape index: {}]   ;;  %s3569_s3 = inlined_call_operand.vmem [shape: f32[8,1,16], index: 3, kind: input, shape index: {}]   ;;  %s3570_s4 = inlined_call_operand.vmem [shape: f32[8,1,1], index: 4, kind: input, shape index: {}]   ;;  %s3571_s5 = inlined_call_operand.hbm [shape: f32[8,1,32], index: 5, kind: input, shape index: {}]   ;;  %s3572_s6 = inlined_call_operand.vmem [shape: f32[8,1,1], index: 6, kind: input, shape index: {}]   ;;  %s3573_s7 = inlined_call_operand.hbm [shape: bf16[16,256], index: 7, kind: input, shape index: {}]   ;;  %s3574_s8 = inlined_call_operand.hbm [shape: f32[1,256], index: 8, kind: input, shape index: {}]   ;;  %s3575_s9 = inlined_call_operand.hbm [shape: bf16[32,256], index: 9, kind: input, shape index: {}]   ;;  %s3576_s10 = inlined_call_operand.hbm [shape: f32[1,256], index: 10, kind: input, shape index: {}]   ;;  %s3577_s11 = inlined_call_operand.vmem [shape: f32[8,1,32], index: 11, kind: input, shape index: {}]   ;;  %s3578_s12 = inlined_call_operand.vmem [shape: f32[8,1,1], index: 12, kind: input, shape index: {}]   ;;  %s3579_s13 = inlined_call_operand.hbm [shape: f32[8,1,32], index: 13, kind: input, shape index: {}]   ;;  %s3580_s14 = inlined_call_operand.vmem [shape: f32[8,1,1], index: 14, kind: input, shape index: {}]   ;;  %s3581_s15 = inlined_call_operand.hbm [shape: bf16[32,256], index: 15, kind: input, shape index: {}]   ;;  %s3582_s16 = inlined_call_operand.hbm [shape: f32[1,256], index: 16, kind: input, shape index: {}]   ;;  %s3583_s17 = inlined_call_operand.hbm [shape: bf16[32,256], index: 17, kind: input, shape index: {}]   ;;  %s3584_s18 = inlined_call_operand.hbm [shape: f32[1,256], index: 18, kind: input, shape index: {}]   ;;  %s3585_s19 = inlined_call_operand.vmem [shape: f32[8,1,32], index: 19, kind: input, shape index: {}]   ;;  %s3586_s20 = inlined_call_operand.vmem [shape: f32[8,1,1], index: 20, kind: input, shape index: {}]   ;;  %s3587_s21 = inlined_call_operand.hbm [shape: bf16[32,256], index: 21, kind: input, shape index: {}]   ;;  %s3588_s22 = inlined_call_operand.vmem [shape: f32[1,256], index: 22, kind: input, shape index: {}]   ;;  %s3589_s23 = inlined_call_operand.hbm [shape: f32[8,8,128], index: 23, kind: output, shape index: {0}]   ;;  %s3590_s24 = inlined_call_operand.hbm [shape: f32[2,8,32], index: 24, kind: output, shape index: {1}]   ;;  %s3591_s25 = inlined_call_operand.hbm [shape: f32[2,8,32], index: 25, kind: output, shape index: {2}]  }
   0x1   :  { %3606 = sst [smem:[#allocation45_spill]] %s3566_s0 }
   0x2   :  { %3607 = sst [smem:[#allocation46_spill]] %s3567_s1 }
   0x3   :  { %3608 = sst [smem:[#allocation47_spill]] %s3568_s2 }
   0x4   :  { %3609 = sst [smem:[#allocation48_spill]] %s3569_s3 }
   0x5   :  { %3610 = sst [smem:[#allocation49_spill]] %s3570_s4 }
   0x6   :  { %3611 = sst [smem:[#allocation50_spill]] %s3571_s5 }
   0x7   :  { %3612 = sst [smem:[#allocation51_spill]] %s3572_s6 }
   0x8   :  { %3613 = sst [smem:[#allocation52_spill]] %s3573_s7 }
   0x9   :  { %3614 = sst [smem:[#allocation53_spill]] %s3574_s8 }
   0xa   :  { %3615 = sst [smem:[#allocation54_spill]] %s3575_s9 }
   0xb   :  { %3616 = sst [smem:[#allocation55_spill]] %s3576_s10 }
   0xc   :  { %3617 = sst [smem:[#allocation56_spill]] %s3577_s11 }
   0xd   :  { %3618 = sst [smem:[#allocation57_spill]] %s3578_s12 }
   0xe   :  { %3619 = sst [smem:[#allocation58_spill]] %s3579_s13 }
   0xf   :  { %3620 = sst [smem:[#allocation59_spill]] %s3580_s14 }
  0x10   :  { %3621 = sst [smem:[#allocation60_spill]] %s3581_s15 }
  0x11   :  { %3622 = sst [smem:[#allocation61_spill]] %s3582_s16 }
  0x12   :  { %3623 = sst [smem:[#allocation62_spill]] %s3583_s17 }
  0x13   :  { %3624 = sst [smem:[#allocation63_spill]] %s3584_s18 }
  0x14   :  { %3625 = sst [smem:[#allocation64_spill]] %s3585_s19 }
  0x15   :  { %3626 = sst [smem:[#allocation65_spill]] %s3586_s20 }
  0x16   :  { %3627 = sst [smem:[#allocation66_spill]] %s3587_s21 }
  0x17   :  { %3628 = sst [smem:[#allocation67_spill]] %s3588_s22 }
  0x18   :  { %3629 = sst [smem:[#allocation68_spill]] %s3589_s23 }
  0x19   :  { %3630 = sst [smem:[#allocation69_spill]] %s3590_s24 }
  0x1a   :  { %3631 = sst [smem:[#allocation70_spill]] %s3591_s25 }
  0x1b   :  { %31 = vsyncpa [#allocation5], 0 }
  0x1c   :  { %33 = vsyncpa [#allocation5 + $0x1], 0 }
  0x1d   :  { %34 = vsyncpa [#allocation8], 0 }
  0x1e   :  { %36 = vsyncpa [#allocation8 + $0x1], 0 }
  0x1f   :  { %37 = vsyncpa [#allocation11], 0 }
  0x20   :  { %38 = vsyncpa [#allocation14], 0 }
  0x21   :  { %39 = vsyncpa [#allocation20], 0 }
  0x22   :  { %40 = vsyncpa [#allocation6], 0 }
  0x23   :  { %42 = vsyncpa [#allocation6 + $0x1], 0 }
  0x24   :  { %43 = vsyncpa [#allocation24], 0  ;;  %s3122_s29 = smov 0   ;;  %s3124_s2 = smov 0  }
  0x25   :  { %s3126_s6 = smov 0   ;;  %s3128_s30 = smov 0  }
  0x26   :  { %s3130_s7 = smov 0   ;;  %s3132_s3 = smov 0  }
  0x27 LB: > { %3632 = sst [smem:[#allocation38_spill]] %s2955_s2  ;;  %s3153_s26 = sadd.s32 4294967295, %s2971_s3   ;;  %s2971_s3 = sphi %s3132_s3, %s49_s3   ;;  %s2967_s7 = sphi %s3130_s7, %s3696_s7   ;;  %s2963_s30 = sphi %s3128_s30, %s3695_s30   ;;  %s2959_s6 = sphi %s3126_s6, %s3694_s6   ;;  %s2955_s2 = sphi %s3124_s2, %s3693_s2   ;;  %s2951_s29 = sphi %s3122_s29, %s3692_s29  }
  0x28   : > { %3633 = sst [smem:[#allocation39_spill]] %s2959_s6  ;;  %p2077_p0 = scmp.ge.s32.totalorder %s2971_s3, 1 }
  0x29   : > { %3634 = sst [smem:[#allocation40_spill]] %s2963_s30  ;;  %p84_p1 = scmp.eq.s32.totalorder %s3153_s26, 0 }
  0x2a   : > { %3635 = sst [smem:[#allocation41_spill]] %s2967_s7  ;;  %p696_p2 = scmp.lt.s32.totalorder %s2971_s3, 9 }
  0x2b   : > { %s3636_s27 = sld [smem:[#allocation52_spill]]  ;;  %s2973_s9 = smov [#allocation9]  }
  0x2c   : > { %p3161_p3 = pnand %p2077_p0, %p696_p2  ;;  %s723_s5 = sshll.u32 %s2973_s9, 4  ;;  %s724_s5 = int_to_ptr.vmem [resolvable:$true] %s723_s5 }
  0x2d   : > { %s3639_s1 = sld [smem:[#allocation53_spill]]  ;;  %s3598_s24 = smov 8  }
  0x2e   : > { %p2266_p4 = pneg %p3161_p3  ;;  %s2976_s9 = smov [#allocation10]  }
  0x2f   : > { %s738_s22 = sshll.u32 %s2976_s9, 4  ;;  %s3640_s14 = sld [smem:[#allocation54_spill]]  ;;  %s739_s22 = int_to_ptr.vmem [resolvable:$true] %s738_s22 }
  0x30   : > { %p3169_p5 = pnand %p2266_p4, %p84_p1  ;;  %s3641_s10 = sld [smem:[#allocation55_spill]] }
  0x31   : > { %s721_s4 = sshll.u32 %s3636_s27, 4  ;;  %s3596_s27 = smov 128   ;;  %s722_s4 = int_to_ptr.hbm [resolvable:$true] %s721_s4 }
  0x32   : > { %2269 = dma.hbm_to_vmem [thread:$0]  (!%p3169_p5), %s722_s4, 256, %s724_s5, [#allocation8], %s3596_s27, %s3596_s27, %s3598_s24  }
  0x33   : > { %s736_s8 = sshll.u32 %s3639_s1, 4  ;;  %s2977_s11 = smov [#allocation12]   ;;  %s737_s8 = int_to_ptr.hbm [resolvable:$true] %s736_s8 }
  0x34   : > { %2272 = dma.hbm_to_vmem [thread:$0]  (!%p3169_p5), %s737_s8, 32, %s739_s22, [#allocation11]  }
  0x35   : > { %s747_s12 = sshll.u32 %s3640_s14, 4  ;;  %s749_s30 = sshll.u32 %s2977_s11, 4  ;;  %s748_s12 = int_to_ptr.hbm [resolvable:$true] %s747_s12  ;;  %s750_s30 = int_to_ptr.vmem [resolvable:$true] %s749_s30 }
  0x36   : > { %s762_s1 = sshll.u32 %s3641_s10, 4  ;;  %s2978_s14 = smov [#allocation13]   ;;  %s763_s1 = int_to_ptr.hbm [resolvable:$true] %s762_s1 }
  0x37   : > { %2275 = dma.hbm_to_vmem [thread:$0]  (!%p3169_p5), %s748_s12, 512, %s750_s30, [#allocation11], %s3596_s27, %s3596_s27, %s3598_s24  }
  0x38   : > { %s764_s19 = sshll.u32 %s2978_s14, 4  ;;  %s3642_s15 = sld [smem:[#allocation60_spill]]  ;;  %s765_s19 = int_to_ptr.vmem [resolvable:$true] %s764_s19 }
  0x39   : > { %2278 = dma.hbm_to_vmem [thread:$0]  (!%p3169_p5), %s763_s1, 32, %s765_s19, [#allocation14]  }
  0x3a   : > { %s3643_s18 = sld [smem:[#allocation63_spill]]  ;;  %s2979_s30 = smov [#allocation16]  }
  0x3b   : > { %s775_s8 = sshll.u32 %s2979_s30, 4  ;;  %s2980_s9 = smov [#allocation19]   ;;  %s776_s8 = int_to_ptr.vmem [resolvable:$true] %s775_s8 }
  0x3c   : > { %s816_s23 = sshll.u32 %s2980_s9, 4  ;;  %s2076_s25 = sadd.s32 4294967294, %s2971_s3   ;;  %s817_s23 = int_to_ptr.vmem [resolvable:$true] %s816_s23 }
  0x3d   : > { %s58_s1 = sadd.s32 1, %s2967_s7  ;;  %s70_s14 = sadd.s32 1, %s2959_s6 }
  0x3e   : > { %s773_s4 = sshll.u32 %s3642_s15, 4  ;;  %p59_p6 = scmp.ge.s32.totalorder %s58_s1, 8  ;;  %s774_s4 = int_to_ptr.hbm [resolvable:$true] %s773_s4 }
  0x3f   : > { %2281 = dma.hbm_to_vmem [thread:$0]  (!%p3169_p5), %s774_s4, 512, %s776_s8, [#allocation8], %s3596_s27, %s3596_s27, %s3598_s24  }
  0x40   : > { %s814_s12 = sshll.u32 %s3643_s18, 4  ;;  %p77_p7 = scmp.ne.s32.totalorder %s2959_s6, %s2955_s2  ;;  %s815_s12 = int_to_ptr.hbm [resolvable:$true] %s814_s12 }
  0x41   : > { %2290 = dma.hbm_to_vmem [thread:$0]  (!%p3169_p5), %s815_s12, 32, %s817_s23, [#allocation20]  }
  0x42   : > { %p78_p8 = scmp.eq.s32.totalorder %s2971_s3, 0  ;;  %s3698_s1 = smov (%p59_p6, %s58_s1), 0 }
  0x43   : > { %3644 = sst [smem:[#allocation42_spill]] %s3698_s1  ;;  %p83_p10 = scmp.ne.s32.totalorder %s2955_s2, %s2951_s29 }
  0x44   : > { %p3217_p9 = por %p78_p8, %p77_p7  ;;  %s65_s20 = ssub.s32 %s2967_s7, %s3698_s1 }
  0x45   : > { %p631_p11 = scmp.eq.s32.totalorder %s3153_s26, 7  ;;  %p68_p12 = scmp.eq.s32.totalorder %s65_s20, 0 }
  0x46   : > { %p3228_p13 = por %p84_p1, %p83_p10  ;;  %p637_p2 = scmp.eq.s32.totalorder %s2076_s25, 7 }
  0x47   : > { %p3234_p0 = por %p631_p11, %p77_p7  ;;  %p2317_p6 = scmp.lt.s32.totalorder %s2971_s3, 8 }
  0x48   : > { %s3239_s11 = scalar_select %p68_p12, %s2959_s6, %s70_s14  }
  0x49   : > { %p3241_p4 = por %p637_p2, %p83_p10  ;;  %s3248_s30 = sand.u32 1, %s2959_s6  }
  0x4a   : > { %3648 = sst [smem:[#allocation43_spill]] %s3239_s11  ;;  %s2090_s8 = sshll.u32 %s3248_s30, 3 }
  0x4b   : > { %s3649_s5 = scalar_select %p3241_p4, 1, 0 }
  0x4c   : > { %s2091_s9 = sshll.u32 %s2967_s7, 3  ;;  %s3651_s27 = sld [smem:[#allocation45_spill]] }
  0x4d   : > { %3650 = sst [smem:[#allocation44_spill]] %s3649_s5  ;;  %s848_s25 = scalar_lea.vmem [#allocation4], %s2090_s8 }
  0x4e   : > { %s857_s14 = sshll.u32 %s848_s25, 4  ;;  %p3257_p7 = pnand %p2317_p6, %p3217_p9  ;;  %s858_s14 = int_to_ptr.vmem [resolvable:$true] %s857_s14 }
  0x4f   : > { %s3653_s16 = sld [smem:[#allocation61_spill]]  ;;  %s3654_s23 = sand.u32 1, %s2971_s3  }
  0x50   : > { %s3655_s17 = sld [smem:[#allocation62_spill]]  ;;  %s2982_s18 = smov [#allocation18]  }
  0x51   : > { %s801_s12 = sshll.u32 %s2982_s18, 4  ;;  %s3656_s21 = sld [smem:[#allocation66_spill]]  ;;  %s802_s12 = int_to_ptr.vmem [resolvable:$true] %s801_s12 }
  0x52   : > { %s853_s24 = scalar_lea.hbm %s3651_s27, %s2091_s9  ;;  %s3266_s27 = scalar_lea.sflag [#allocation5], %s3654_s23 }
  0x53   : > { %s855_s10 = sshll.u32 %s853_s24, 4  ;;  %s2981_s9 = smov [#allocation17]   ;;  %s856_s10 = int_to_ptr.hbm [resolvable:$true] %s855_s10 }
  0x54   : > { %2297 = dma.hbm_to_vmem [thread:$0]  (!%p3257_p7), %s856_s10, 128, %s858_s14, %s3266_s27  }
  0x55   : > { %s788_s1 = sshll.u32 %s3653_s16, 4  ;;  %s790_s20 = sshll.u32 %s2981_s9, 4  ;;  %s789_s1 = int_to_ptr.hbm [resolvable:$true] %s788_s1  ;;  %s791_s20 = int_to_ptr.vmem [resolvable:$true] %s790_s20 }
  0x56   : > { %s799_s8 = sshll.u32 %s3655_s17, 4  ;;  %s3657_s14 = smov 8   ;;  %s800_s8 = int_to_ptr.hbm [resolvable:$true] %s799_s8 }
  0x57   : > { %2284 = dma.hbm_to_vmem [thread:$0]  (!%p3169_p5), %s789_s1, 32, %s791_s20, [#allocation11]  }
  0x58   : > { %s825_s10 = sshll.u32 %s3656_s21, 4  ;;  %s3658_s24 = smov 128   ;;  %s826_s10 = int_to_ptr.hbm [resolvable:$true] %s825_s10 }
  0x59   : > { %2287 = dma.hbm_to_vmem [thread:$0]  (!%p3169_p5), %s800_s8, 512, %s802_s12, [#allocation14], %s3658_s24, %s3658_s24, %s3657_s14  }
  0x5a   : > { %s2983_s19 = smov [#allocation21]   ;;  %s3659_s16 = sld [smem:[#allocation50_spill]] }
  0x5b   : > { %s827_s9 = sshll.u32 %s2983_s19, 4  ;;  %s879_s23 = scalar_lea.vmem [#allocation7], %s3248_s30  ;;  %s828_s9 = int_to_ptr.vmem [resolvable:$true] %s827_s9 }
  0x5c   : > { %2293 = dma.hbm_to_vmem [thread:$0]  (!%p3169_p5), %s826_s10, 512, %s828_s9, [#allocation20], %s3658_s24, %s3658_s24, %s3657_s14  }
  0x5d   : > { %s886_s17 = sshll.u32 %s879_s23, 4  ;;  %s3660_s8 = sand.u32 1, %s2971_s3   ;;  %s887_s17 = int_to_ptr.vmem [resolvable:$true] %s886_s17 }
  0x5e   : > { %s877_s12 = scalar_lea.sflag [#allocation8], %s3660_s8  ;;  %s3661_s13 = sld [smem:[#allocation58_spill]] }
  0x5f   : > { %s914_s20 = scalar_lea.vmem [#allocation15], %s3248_s30  ;;  %s950_s0 = sand.u32 (!%p3161_p3), 1, %s3153_s26  }
  0x60   : > { %s882_s18 = scalar_lea.hbm %s3659_s16, %s2967_s7  ;;  %s921_s21 = sshll.u32 %s914_s20, 4  ;;  %s922_s21 = int_to_ptr.vmem [resolvable:$true] %s921_s21 }
  0x61   : > { %s884_s25 = sshll.u32 %s882_s18, 4  ;;  %s3310_s10 = sand.u32 (!%p3161_p3), 1, %s2955_s2   ;;  %s885_s25 = int_to_ptr.hbm [resolvable:$true] %s884_s25 }
  0x62   : > { %2300 = dma.hbm_to_vmem [thread:$0]  (!%p3257_p7), %s885_s25, 16, %s887_s17, %s877_s12  }
  0x63   : > { %948 = sbr.rel (%p3161_p3) target bundleno = 1861 (0x745), region = 112  ;;  %s3601_s17 = sshll.u32 (!%p3161_p3), %s3310_s10, 3 }
  0x64   : > { %s917_s16 = scalar_lea.hbm %s3661_s13, %s2967_s7  ;;  %s951_s14 = scalar_lea.sflag (!%p3161_p3), [#allocation5], %s950_s0 }
  0x65   : > { %s919_s18 = sshll.u32 %s917_s16, 4  ;;  %s3315_s30 = scalar_lea.vmem (!%p3161_p3), [#allocation4], %s3601_s17  ;;  %s920_s18 = int_to_ptr.hbm [resolvable:$true] %s919_s18 }
  0x66   : > { %2303 = dma.hbm_to_vmem [thread:$0]  (!%p3257_p7), %s920_s18, 16, %s922_s21, %s3266_s27  }
  0x68   : > { %2902 = dma.done.wait (%p3228_p13), %s951_s14, 128  }
  0x69   : > { %2904 = vsyncadd (%p3228_p13), %s951_s14, 4294967168  ;;  %s961_s15 = scalar_lea.sflag [#allocation8], %s950_s0 }
  0x6a   : > { %2906 = dma.done.wait (%p3228_p13), %s961_s15, 16  }
  0x6b   : > { %2908 = vsyncadd (%p3228_p13), %s961_s15, 4294967280 }
  0x6c   : > { %2910 = dma.done.wait (%p84_p1), [#allocation8], 256  }
  0x6d   : > { %2912 = vsyncadd (%p84_p1), [#allocation8], 4294967040 }
  0x6e   : > { %2914 = dma.done.wait (%p84_p1), [#allocation11], 544  }
  0x6f   : > { %2916 = vsyncadd (%p84_p1), [#allocation11], 4294966752 }
  0x70   : > { %2918 = dma.done.wait (%p84_p1), [#allocation14], 32  }
  0x71   : > { %2920 = vsyncadd (%p84_p1), [#allocation14], 4294967264 }
  0x72   : > { %2922 = dma.done.wait (%p3228_p13), %s951_s14, 16  }
  0x73   : > { %2924 = vsyncadd (%p3228_p13), %s951_s14, 4294967280 }
  0x74   : > { %2926 = dma.done.wait (%p84_p1), [#allocation8], 512  }
  0x75   : > { %2928 = vsyncadd (%p84_p1), [#allocation8], 4294966784 }
  0x76   : > { %2930 = dma.done.wait (%p84_p1), [#allocation11], 32  }
  0x77   : > { %2932 = vsyncadd (%p84_p1), [#allocation11], 4294967264 }
  0x78   : > { %2934 = dma.done.wait (%p84_p1), [#allocation14], 512  }
  0x79   : > { %2936 = vsyncadd (%p84_p1), [#allocation14], 4294966784 }
  0x7a   : > { %2938 = dma.done.wait (%p84_p1), [#allocation20], 544  }
  0x7b   : > { %2940 = vsyncadd (%p84_p1), [#allocation20], 4294966752  ;;  %s3662_s22 = sld [smem:[#allocation40_spill]]  ;;  %s3671_s18 = sshll.u32 %s3310_s10, 3 }
  0x7c   : > { %s3663_s25 = sld [smem:[#allocation48_spill]]  ;;  %s3397_s0 = scalar_lea.vmem [#allocation22], %s3671_s18 }
  0x7d   : > { %s3666_s28 = sld [smem:[#allocation56_spill]] }
  0x7e   : > { %s3667_s17 = sld [smem:[#allocation57_spill]] }
  0x7f   : > { %s3668_s6 = sld [smem:[#allocation59_spill]] }
  0x80   : > { %s3669_s8 = sld [smem:[#allocation64_spill]] }
  0x81   : > { %p1133_p3 = scmp.lt.s32.totalorder %s3662_s22, 7  ;;  %s3670_s16 = sld [smem:[#allocation65_spill]] }
  0x82   : > { %p2104_p1 = scmp.ne.s32.totalorder %s3662_s22, 0 }
  0x83   : > { %s3361_s27 = scalar_select %p1133_p3, %s3662_s22, 7 }
  0x84   : > { %1161 = sbr.rel (%p2104_p1) target bundleno = 145 (0x91), region = 164  ;;  %s3673_s5 = sld [smem:[#allocation47_spill]] (!%p2104_p1) }
  0x85   : > { %s1135_s23 = scalar_lea.vmem %s3663_s25, %s3361_s27  ;;  %s1144_s24 = scalar_lea.vmem %s3666_s28, %s3361_s27 }
  0x86   : > { %s1147_s13 = scalar_lea.vmem %s3667_s17, %s3361_s27  ;;  %s1150_s25 = scalar_lea.vmem %s3668_s6, %s3361_s27 }
  0x87   : > { %s1153_s12 = scalar_lea.vmem %s3669_s8, %s3361_s27  ;;  %s1156_s20 = scalar_lea.vmem %s3670_s16, %s3361_s27 }
  0x88   : > { %s3672_s28 = sld [smem:[#allocation46_spill]] (!%p2104_p1) }
  0x89   : > { %vm1164_vm0 = vcmask 261120  }
  0x8a   : > { %v1167_v2 = vld [vmem:[%s3673_s5] sm:$0xff]  ;;  %v1168_v3 = vld [vmem:[%s3673_s5 + $0x8] sm:$0xff] }
  0x8b   : > { %1169 = vst.msk [vmem:[#allocation3] sm:$0xff] %vm1164_vm0, %v1167_v2 }
  0x8c   : > { %1170 = vst.msk [vmem:[#allocation3 + $0x8] sm:$0xff] %vm1164_vm0, %v1168_v3 }
  0x8e   : > { %v1162_v0 = vld [vmem:[%s3672_s28] sm:$0xff]  ;;  %v1163_v1 = vld [vmem:[%s3672_s28 + $0x8] sm:$0xff] }
  0x8f   : > { %1165 = vst.msk [vmem:[#allocation2] sm:$0xff] %vm1164_vm0, %v1162_v0 }
  0x90   : > { %1166 = vst.msk [vmem:[#allocation2 + $0x8] sm:$0xff] %vm1164_vm0, %v1163_v1 }
  0x91 PF: > { %v1171_v4 = vld [vmem:[%s3315_s30] sm:$0xff]  ;;  %vm1193_vm1 = vcmask 130048   ;;  %s3674_s22 = scalar_lea.vmem [#allocation7], %s3310_s10  ;;  %v2125_v9 = vld [vmem:[#allocation12 + $0x10] sm:$0xf]  ;;  %vm1279_vm2 = vcmask 261120  }
  0x92   : > { %v2401_v5 = vld [vmem:[%s1135_s23] ss:$0 sm:$0xff]  ;;  %v2201_v10 = vld [vmem:[#allocation12 + $0x14] sm:$0xf0]  ;;  %v2200_v11 = vld [vmem:[#allocation12 + $0x14] sm:$0xf]  ;;  %v1174_v28 = vpack.c.bf16 %v1171_v4, %v1171_v4 }
  0x93   : > { %v2402_v7 = vld [vmem:[%s3674_s22] ss:$0 sm:$0xff]  ;;  %v1227_v8 = vmul.f32 %v2401_v5, %v1171_v4  ;;  %v2126_v12 = vor.u32 %v2201_v10, %v2125_v9  ;;  %v2117_v14 = vld [vmem:[#allocation12] sm:$0xf]  ;;  %v2199_v15 = vld [vmem:[#allocation12 + $0x4] sm:$0xf0] }
  0x94   : > { %v2127_v13 = vld [vmem:[#allocation12 + $0x18] sm:$0xf0]  ;;  %v2198_v18 = vld [vmem:[#allocation12 + $0x4] sm:$0xf]  ;;  %v2119_v19 = vld [vmem:[#allocation12 + $0x8] sm:$0xf0]  ;;  %v2118_v20 = vor.u32 %v2199_v15, %v2117_v14 }
  0x95   : > { %v1228_v16 = vsel %vm1193_vm1, %v1227_v8, 0.0  ;;  %v2130_v17 = vor.u32 %v2200_v11, %v2127_v13  ;;  %1289 = vmatpush.bf16.msra.mxu2 %v2126_v12  ;;  %v2107_v21 = vld [vmem:[#allocation9] sm:$0xf]  ;;  %v2197_v22 = vld [vmem:[#allocation9 + $0x4] sm:$0xf0]  ;;  %v2122_v24 = vor.u32 %v2198_v18, %v2119_v19  ;;  %v2984_v32 = vmov 0  }
  0x96   : > { %v1172_v6 = vld [vmem:[#allocation2] sm:$0xff]  ;;  %1229 = vadd.xlane.f32.xlu0 %v1228_v16  ;;  %v2108_v25 = vor.u32 %v2197_v22, %v2107_v21  ;;  %v2196_v26 = vld [vmem:[#allocation9 + $0x4] sm:$0xf]  ;;  %2399 = vset.pattern.permute.xlu1 %v2984_v32  ;;  %s3675_s15 = sld [smem:[#allocation49_spill]]  ;;  %s2985_s21 = smov 64  }
  0x97   : > { %v1313_v23 = vmul.f32 %v2402_v7, %v1172_v6  ;;  %1302 = vmatpush.bf16.msra.mxu3 %v2130_v17  ;;  %v2109_v27 = vld [vmem:[#allocation9 + $0x8] sm:$0xf0]  ;;  %v1248_v30 = vpack.c.bf16 %v1172_v6, %v1172_v6  ;;  %2400 = vset.pattern.permute.xlu0 %v2984_v32  ;;  %s3677_s16 = sld [smem:[#allocation51_spill]]  ;;  %v1177_v55 = vld [vmem:[#allocation10] sm:$0x3]  ;;  %v1173_v11 = vld [vmem:[#allocation3] sm:$0xff] }
  0x98   : > { %v2112_v29 = vor.u32 %v2196_v26, %v2109_v27  ;;  %1204 = vmatpush.bf16.msra.mxu0 %v2108_v25  ;;  %v1179_v56 = vperm.slane %v1177_v55, 0  ;;  %v1180_v57 = vperm.slane %v1177_v55, 1  ;;  %v1253_v58 = vld [vmem:[#allocation13] sm:$0x3]  ;;  %s2986_s17 = smov 32   ;;  %s2987_s11 = smov 96  }
  0x99   : > { %1290 = vmatpush.bf16.msra.mxu2 %v2118_v20  ;;  %v1314_v31 = vsel %vm1279_vm2, %v1313_v23, 0.0  ;;  %v1255_v61 = vperm.slane %v1253_v58, 0  ;;  %v1256_v62 = vperm.slane %v1253_v58, 1  ;;  %v2405_v18 = vld [vmem:[%s1144_s24] ss:$0 sm:$0xff]  ;;  %s3680_s24 = scalar_lea.vmem [#allocation15], %s3310_s10 }
  0x9a   : > { %1217 = vmatpush.bf16.msra.mxu1 %v2112_v29  ;;  %v1372_v29 = vld [vmem:[#allocation2 + $0x8] sm:$0xff]  ;;  %v2205_v32 = vld [vmem:[#allocation16 + $0x14] sm:$0xf0]  ;;  %s3684_s19 = sld [smem:[#allocation67_spill]] }
  0x9b   : > { %1303 = vmatpush.bf16.msra.mxu3 %v2122_v24  ;;  %2113 = vmatmul.msk.bf16.vlgmr.msra.gmra.mxu0 %vm1193_vm1, %v1174_v28 }
  0x9c   : > { %2131 = vmatmul.msk.bf16.vlgmr.msra.gmra.mxu2 %vm1279_vm2, %v1248_v30  ;;  %s3676_s9 = scalar_lea.vmem %s3675_s15, %s3361_s27 }
  0x9d   : > { %2114 = vmatmul.msk.bf16.vlgmr.msra.gmra.mxu1 %vm1193_vm1, %v1174_v28  ;;  %v2403_v33 = vld [vmem:[%s3676_s9] ss:$0 sm:$0xff]  ;;  %s3678_s18 = scalar_lea.vmem %s3677_s16, %s3361_s27  ;;  %s3686_s27 = sld [smem:[#allocation40_spill]] }
  0x9e   : > { %1315 = vadd.xlane.f32.xlu0 %v1314_v31  ;;  %2132 = vmatmul.msk.bf16.vlgmr.msra.gmra.mxu3 %vm1279_vm2, %v1248_v30  ;;  %v2404_v37 = vld [vmem:[%s3678_s18] ss:$0 sm:$0xff]  ;;  %v2143_v31 = vld [vmem:[#allocation16 + $0x10] sm:$0xf] }
  0x9f   : > { %v2406_v30 = vld [vmem:[%s3680_s24] ss:$0 sm:$0xff] }
  0xa3   : > { %p2187_p5 = scmp.ne.s32.totalorder %s3686_s27, 7 }
 0x109   : > { %v1230_v34 = vpop.xlane.xlu0 %1229 }
 0x10a   : > { %v1235_v35 = vadd.f32 %v2403_v33, %v1230_v34  ;;  %v2204_v33 = vld [vmem:[#allocation16 + $0x14] sm:$0xf]  ;;  %v2145_v34 = vld [vmem:[#allocation16 + $0x18] sm:$0xf0] }
 0x10c   : > { %v1236_v36 = vmul.f32 0.5, %v1235_v35  ;;  %v1533_v35 = vmul.f32 %v2406_v30, %v1372_v29 }
 0x10e   : > { %2411 = vtanh.f32 %v1236_v36  ;;  %v2144_v36 = vor.u32 %v2205_v32, %v2143_v31 }
 0x110   : > { %1418 = vmatpush.bf16.msrb.mxu0 %v2144_v36 }
 0x111   : > { %v1316_v38 = vpop.xlane.xlu0 %1315 }
 0x112   : > { %v1321_v39 = vadd.f32 %v2404_v37, %v1316_v38  ;;  %v2148_v37 = vor.u32 %v2204_v33, %v2145_v34  ;;  %v2135_v38 = vld [vmem:[#allocation16] sm:$0xf] }
 0x114   : > { %v2412_v40 = vpop.eup %2411  ;;  %v1322_v41 = vmul.f32 0.5, %v1321_v39  ;;  %v2203_v39 = vld [vmem:[#allocation16 + $0x4] sm:$0xf0]  ;;  %1431 = vmatpush.bf16.msrb.mxu1 %v2148_v37 }
 0x115   : > { %v1238_v42 = vadd.f32 1.0, %v2412_v40  ;;  %v2202_v40 = vld [vmem:[#allocation16 + $0x4] sm:$0xf] }
 0x116   : > { %2413 = vtanh.f32 %v1322_v41  ;;  %v2137_v41 = vld [vmem:[#allocation16 + $0x8] sm:$0xf0] }
 0x117   : > { %v1239_v43 = vmul.f32 0.5, %v1238_v42  ;;  %v1534_v42 = vsel %vm1279_vm2, %v1533_v35, 0.0 }
 0x118   : > { %v1206_v44 = vpop.f32.mrf.mxu0 }
 0x119   : > { %1243 = vperm.xlu1 %2399, %v1239_v43   ;;  %v1207_v59 = vadd.f32 %v1206_v44, %v1179_v56  ;;  %v2136_v43 = vor.u32 %v2203_v39, %v2135_v38  ;;  %v2140_v44 = vor.u32 %v2202_v40, %v2137_v41  ;;  %v1374_v41 = vld [vmem:[#allocation3 + $0x8] sm:$0xff] }
 0x11a   : > { %v1219_v45 = vpop.f32.mrf.mxu1 }
 0x11b   : > { %v1220_v60 = vadd.f32 %v1219_v45, %v1180_v57  ;;  %1419 = vmatpush.bf16.msrb.mxu0 %v2136_v43  ;;  %1432 = vmatpush.bf16.msrb.mxu1 %v2140_v44  ;;  %v2161_v45 = vld [vmem:[#allocation18 + $0x10] sm:$0xf]  ;;  %v1469_v57 = vpack.c.bf16 %v1372_v29, %v1372_v29 }
 0x11c   : > { %v2414_v46 = vpop.eup %2413 }
 0x11d   : > { %v1324_v47 = vadd.f32 1.0, %v2414_v46  ;;  %v1240_v1 = vsub.f32 %v1220_v60, %v1207_v59  ;;  %v2209_v46 = vld [vmem:[#allocation18 + $0x14] sm:$0xf0] }
 0x11f   : > { %v1325_v48 = vmul.f32 0.5, %v1324_v47  ;;  %v1292_v49 = vpop.f32.mrf.mxu2  ;;  %v2208_v47 = vld [vmem:[#allocation18 + $0x14] sm:$0xf] }
 0x120   : > { %v1208_v51 = vpop.f32.mrf.mxu0  ;;  %v1293_v63 = vadd.f32 %v1292_v49, %v1255_v61  ;;  %v2163_v49 = vld [vmem:[#allocation18 + $0x18] sm:$0xf0]  ;;  %v2408_v61 = vld [vmem:[%s1150_s25] ss:$0 sm:$0xff] }
 0x121   : > { %1329 = vperm.xlu1 %2399, %v1325_v48   ;;  %v1305_v50 = vpop.f32.mrf.mxu3  ;;  %v2162_v48 = vor.u32 %v2209_v46, %v2161_v45  ;;  %v2207_v51 = vld [vmem:[#allocation18 + $0x4] sm:$0xf0] }
 0x122   : > { %v1221_v52 = vpop.f32.mrf.mxu1  ;;  %v1306_v0 = vadd.f32 %v1305_v50, %v1256_v62  ;;  %v2153_v50 = vld [vmem:[#allocation18] sm:$0xf] }
 0x123   : > { %v2166_v52 = vor.u32 %v2208_v47, %v2163_v49  ;;  %1509 = vmatpush.bf16.msrb.mxu2 %v2162_v48  ;;  %v2154_v55 = vor.u32 %v2207_v51, %v2153_v50  ;;  %v2409_v48 = vld [vmem:[%s1153_s12] ss:$0 sm:$0xff] }
 0x124   : > { %v1326_v2 = vsub.f32 %v1306_v0, %v1293_v63 }
 0x125   : > { %1522 = vmatpush.bf16.msrb.mxu3 %v2166_v52 }
 0x127   : > { %v1294_v53 = vpop.f32.mrf.mxu2  ;;  %1510 = vmatpush.bf16.msrb.mxu2 %v2154_v55  ;;  %v2213_v55 = vld [vmem:[#allocation21 + $0x14] sm:$0xf0] }
 0x128   : > { %v2206_v53 = vld [vmem:[#allocation18 + $0x4] sm:$0xf] }
 0x129   : > { %v1307_v54 = vpop.f32.mrf.mxu3 }
 0x12a   : > { %v2155_v54 = vld [vmem:[#allocation18 + $0x8] sm:$0xf0]  ;;  %2167 = vmatmul.msk.bf16.vlgmr.msrb.gmra.mxu2 %vm1279_vm2, %v1469_v57 }
 0x12b   : > { %v2158_v56 = vor.u32 %v2206_v53, %v2155_v54  ;;  %v2179_v54 = vld [vmem:[#allocation21 + $0x10] sm:$0xf] }
 0x12d   : > { %1523 = vmatpush.bf16.msrb.mxu3 %v2158_v56  ;;  %v2212_v56 = vld [vmem:[#allocation21 + $0x14] sm:$0xf] }
 0x130   : > { %2168 = vmatmul.msk.bf16.vlgmr.msrb.gmra.mxu3 %vm1279_vm2, %v1469_v57  ;;  %v2180_v57 = vor.u32 %v2213_v55, %v2179_v54 }
 0x132   : > { %1634 = vmatpush.bf16.msra.mxu0 %v2180_v57 }
 0x18b   : > { %v1244_v3 = vpop.permute.xlu1 %1243 }
 0x18c   : > { %v1246_v4 = vmul.f32 %v1244_v3, %v1240_v1 }
 0x18e   : > { %v1247_v5 = vadd.f32 %v1246_v4, %v1207_v59 }
 0x193   : > { %v1330_v6 = vpop.permute.xlu1 %1329 }
 0x194   : > { %v1332_v7 = vmul.f32 %v1330_v6, %v1326_v2 }
 0x196   : > { %v1333_v8 = vadd.f32 %v1332_v7, %v1293_v63  ;;  %v2407_v63 = vld [vmem:[%s1147_s13] ss:$0 sm:$0xff] }
 0x198   : > { %v1334_v9 = vadd.f32 %v1333_v8, %v1247_v5 }
 0x19a   : > { %2415 = vtanh.f32 %v1334_v9  ;;  %v1335_v12 = vmul.f32 0.5, %v1334_v9 }
 0x19c   : > { %2417 = vtanh.f32 %v1335_v12 }
 0x1a0   : > { %v2416_v10 = vpop.eup %2415 }
 0x1a1   : > { %1346 = vrot.lane.b32.xlu2 %v2416_v10, %s2985_s21 }
 0x1a2   : > { %v2418_v13 = vpop.eup %2417 }
 0x1a3   : > { %v1337_v14 = vadd.f32 1.0, %v2418_v13 }
 0x1a5   : > { %v1338_v15 = vmul.f32 0.5, %v1337_v14 }
 0x1a9   : > { %1341 = vrot.lane.b32.xlu2 %v1173_v11, %s2986_s17 }
 0x1ad   : > { %v1512_v10 = vpop.f32.mrf.mxu2 }
 0x1b1   : > { %1441 = vrot.lane.b32.xlu2 %v2405_v18, %s2987_s11 }
 0x1b3   : > { %v1525_v11 = vpop.f32.mrf.mxu3 }
 0x1b5   : > { %v1514_v13 = vpop.f32.mrf.mxu2 }
 0x1b6   : > { %v2410_v13 = vld [vmem:[%s1156_s20] ss:$0 sm:$0xff] }
 0x1bb   : > { %v1527_v14 = vpop.f32.mrf.mxu3 }
 0x1fb   : > { %v1347_v16 = vpop.permute.xlu2 %1346 }
 0x1fc   : > { %v1349_v17 = vmul.f32 %v1347_v16, %v1338_v15 }
 0x1fe   : > { %1351 = vrot.lane.b32.xlu0 %v1349_v17, %s2986_s17 }
 0x203   : > { %v1342_v19 = vpop.permute.xlu2 %1341 }
 0x204   : > { %v1344_v20 = vmul.f32 %v1342_v19, %v1338_v15 }
 0x20b   : > { %v1442_v25 = vpop.permute.xlu2 %1441 }
 0x270   : > { %v1352_v21 = vpop.permute.xlu0 %1351 }
 0x271   : > { %v3440_v22 = vadd.f32 %v1352_v21, %v1344_v20 }
 0x273   : > { %2419 = vtanh.f32 %v3440_v22 }
 0x279   : > { %v2420_v23 = vpop.eup %2419 }
 0x27a   : > { %1357 = vrot.lane.b32.xlu1 %v2420_v23, %s2985_s21 }
 0x2ec   : > { %v1358_v24 = vpop.permute.xlu1 %1357 }
 0x2ed   : > { %v3444_v26 = vmul.f32 %v1358_v24, %v1338_v15  ;;  %v1380_v15 = vld [vmem:[#allocation17] sm:$0x3] }
 0x2ee   : > { %v1382_v16 = vperm.slane %v1380_v15, 0  ;;  %v1383_v17 = vperm.slane %v1380_v15, 1 }
 0x2ef   : > { %v1444_v27 = vmul.f32 %v1442_v25, %v3444_v26  ;;  %v1375_v28 = vpack.c.bf16 %v3444_v26, %v3444_v26 }
 0x2f1   : > { %1446 = vrot.lane.b32.xlu2 %v1444_v27, %s2986_s17  ;;  %1387 = vrot.lane.b32.xlu1 %v1375_v28, %s2986_s17  ;;  %v1474_v27 = vld [vmem:[#allocation19] sm:$0x3] }
 0x2f2   : > { %v1476_v28 = vperm.slane %v1474_v27, 0  ;;  %v1477_v29 = vperm.slane %v1474_v27, 1 }
 0x2f4   : > { %v1513_v30 = vadd.f32 %v1512_v10, %v1476_v28  ;;  %v1526_v31 = vadd.f32 %v1525_v11, %v1477_v29 }
 0x2f6   : > { %v1546_v32 = vsub.f32 %v1526_v31, %v1513_v30 }
 0x31a   : > { %1535 = vadd.xlane.f32.xlu2 %v1534_v42 }
 0x34b   : > { %v1447_v58 = vpop.permute.xlu2 %1446 }
 0x34c   : > { %v1449_v59 = vsel %vm1279_vm2, %v1447_v58, 0.0  ;;  %v2181_v58 = vld [vmem:[#allocation21 + $0x18] sm:$0xf0] }
 0x34d   : > { %1450 = vadd.xlane.f32.xlu1 %v1449_v59  ;;  %v2171_v59 = vld [vmem:[#allocation21] sm:$0xf] }
 0x363   : > { %v1388_v60 = vpop.permute.xlu1 %1387 }
 0x364   : > { %2149 = vmatmul.msk.bf16.vlgmr.msrb.gmra.mxu0 %vm1279_vm2, %v1388_v60  ;;  %2150 = vmatmul.msk.bf16.vlgmr.msrb.gmra.mxu1 %vm1279_vm2, %v1388_v60  ;;  %v2211_v60 = vld [vmem:[#allocation21 + $0x4] sm:$0xf0] }
 0x38d   : > { %v1536_v62 = vpop.xlane.xlu2 %1535 }
 0x38e   : > { %v1541_v0 = vadd.f32 %v2408_v61, %v1536_v62  ;;  %v2184_v61 = vor.u32 %v2212_v56, %v2181_v58  ;;  %v2210_v62 = vld [vmem:[#allocation21 + $0x4] sm:$0xf] }
 0x390   : > { %v1542_v4 = vmul.f32 0.5, %v1541_v0  ;;  %1647 = vmatpush.bf16.msra.mxu1 %v2184_v61 }
 0x3c0   : > { %v1451_v1 = vpop.xlane.xlu1 %1450 }
 0x3c1   : > { %v1456_v2 = vadd.f32 %v2407_v63, %v1451_v1  ;;  %v2173_v63 = vld [vmem:[#allocation21 + $0x8] sm:$0xf0]  ;;  %v2172_v1 = vor.u32 %v2211_v60, %v2171_v59 }
 0x3c3   : > { %v1457_v3 = vmul.f32 0.5, %v1456_v2  ;;  %1635 = vmatpush.bf16.msra.mxu0 %v2172_v1 }
 0x3c5   : > { %2421 = vtanh.f32 %v1457_v3  ;;  %v2176_v3 = vor.u32 %v2210_v62, %v2173_v63 }
 0x3c6   : > { %2423 = vtanh.f32 %v1542_v4 }
 0x3c7   : > { %1648 = vmatpush.bf16.msra.mxu1 %v2176_v3 }
 0x3cb   : > { %v2422_v5 = vpop.eup %2421 }
 0x3cc   : > { %v1459_v6 = vadd.f32 1.0, %v2422_v5  ;;  %v2424_v7 = vpop.eup %2423 }
 0x3cd   : > { %v1544_v9 = vadd.f32 1.0, %v2424_v7 }
 0x3ce   : > { %v1460_v8 = vmul.f32 0.5, %v1459_v6 }
 0x3cf   : > { %v1545_v12 = vmul.f32 0.5, %v1544_v9 }
 0x3d0   : > { %1464 = vperm.xlu0 %2400, %v1460_v8  }
 0x3d8   : > { %1549 = vperm.xlu0 %2400, %v1545_v12  }
 0x3e1   : > { %v1421_v18 = vpop.f32.mrf.mxu0  ;;  %v1434_v19 = vpop.f32.mrf.mxu1 }
 0x3e2   : > { %v1422_v20 = vadd.f32 %v1421_v18, %v1382_v16  ;;  %v1435_v21 = vadd.f32 %v1434_v19, %v1383_v17 }
 0x3e4   : > { %v1461_v23 = vsub.f32 %v1435_v21, %v1422_v20 }
 0x3e9   : > { %v1423_v24 = vpop.f32.mrf.mxu0  ;;  %v1436_v25 = vpop.f32.mrf.mxu1 }
 0x442   : > { %v1465_v33 = vpop.permute.xlu0 %1464 }
 0x443   : > { %v1467_v34 = vmul.f32 %v1465_v33, %v1461_v23 }
 0x445   : > { %v1468_v35 = vadd.f32 %v1467_v34, %v1422_v20 }
 0x44a   : > { %v1550_v36 = vpop.permute.xlu0 %1549 }
 0x44b   : > { %v1552_v37 = vmul.f32 %v1550_v36, %v1546_v32 }
 0x44d   : > { %v1553_v38 = vadd.f32 %v1552_v37, %v1513_v30 }
 0x44f   : > { %v1554_v39 = vadd.f32 %v1553_v38, %v1468_v35 }
 0x451   : > { %2425 = vtanh.f32 %v1554_v39  ;;  %v1555_v42 = vmul.f32 0.5, %v1554_v39 }
 0x453   : > { %2427 = vtanh.f32 %v1555_v42 }
 0x457   : > { %v2426_v40 = vpop.eup %2425 }
 0x458   : > { %1566 = vrot.lane.b32.xlu0 %v2426_v40, %s2985_s21 }
 0x459   : > { %v2428_v43 = vpop.eup %2427 }
 0x45a   : > { %v1557_v44 = vadd.f32 1.0, %v2428_v43 }
 0x45c   : > { %v1558_v45 = vmul.f32 0.5, %v1557_v44 }
 0x460   : > { %1561 = vrot.lane.b32.xlu0 %v1374_v41, %s2986_s17 }
 0x468   : > { %1657 = vrot.lane.b32.xlu0 %v2409_v48, %s2987_s11 }
 0x4ca   : > { %v1567_v46 = vpop.permute.xlu0 %1566 }
 0x4cb   : > { %v1569_v47 = vmul.f32 %v1567_v46, %v1558_v45 }
 0x4cd   : > { %1571 = vrot.lane.b32.xlu2 %v1569_v47, %s2986_s17 }
 0x4d2   : > { %v1562_v49 = vpop.permute.xlu0 %1561 }
 0x4d3   : > { %v1564_v50 = vmul.f32 %v1562_v49, %v1558_v45 }
 0x527   : > { %v1572_v51 = vpop.permute.xlu2 %1571 }
 0x528   : > { %v1574_v52 = vadd.f32 %v1572_v51, %v1564_v50 }
 0x52a   : > { %2429 = vtanh.f32 %v1574_v52 }
 0x530   : > { %v2430_v53 = vpop.eup %2429 }
 0x531   : > { %1577 = vrot.lane.b32.xlu1 %v2430_v53, %s2985_s21 }
 0x539   : > { %1362 = vrot.lane.b32.xlu1 %v3444_v26, %s2986_s17  ;;  %v1658_v26 = vpop.permute.xlu0 %1657 }
 0x5a3   : > { %v1578_v0 = vpop.permute.xlu1 %1577 }
 0x5a4   : > { %v1580_v2 = vmul.f32 %v1578_v0, %v1558_v45 }
 0x5a6   : > { %1582 = vrot.lane.b32.xlu1 %v1580_v2, %s2986_s17  ;;  %v1591_v4 = vpack.c.bf16 %v1580_v2, %v1580_v2  ;;  %v1660_v6 = vmul.f32 %v1658_v26, %v1580_v2 }
 0x5a8   : > { %1603 = vrot.lane.b32.xlu0 %v1591_v4, %s2986_s17 }
 0x5ab   : > { %v1363_v5 = vpop.permute.xlu1 %1362 }
 0x5ac   : > { %1365 = vst.msk [vmem:[#allocation2] sm:$0xff] %vm1279_vm2, %v1363_v5 }
 0x5b0   : > { %1662 = vrot.lane.b32.xlu0 %v1660_v6, %s2986_s17 }
 0x5b8   : > { %1367 = vrot.lane.b32.xlu0 %v3440_v22, %s2987_s11  ;;  %v1596_v22 = vld [vmem:[%s3684_s19] sm:$0x3] }
 0x5b9   : > { %v1598_v14 = vperm.slane %v1596_v22, 0  ;;  %v1599_v15 = vperm.slane %v1596_v22, 1 }
 0x5c0   : > { %1587 = vrot.lane.b32.xlu0 %v1574_v52, %s2987_s11 }
 0x618   : > { %v1583_v7 = vpop.permute.xlu1 %1582 }
 0x619   : > { %1585 = vst.msk [vmem:[#allocation2 + $0x8] sm:$0xff] %vm1279_vm2, %v1583_v7 }
 0x61a   : > { %v1604_v8 = vpop.permute.xlu0 %1603 }
 0x61b   : > { %2185 = vmatmul.msk.bf16.vlgmr.msra.gmra.mxu0 %vm1279_vm2, %v1604_v8  ;;  %2186 = vmatmul.msk.bf16.vlgmr.msra.gmra.mxu1 %vm1279_vm2, %v1604_v8 }
 0x622   : > { %v1663_v9 = vpop.permute.xlu0 %1662 }
 0x623   : > { %v1665_v10 = vsel %vm1279_vm2, %v1663_v9, 0.0 }
 0x624   : > { %1666 = vadd.xlane.f32.xlu2 %v1665_v10 }
 0x62a   : > { %v1368_v11 = vpop.permute.xlu0 %1367 }
 0x62b   : > { %1370 = vst.msk [vmem:[#allocation3] sm:$0xff] %vm1279_vm2, %v1368_v11 }
 0x632   : > { %v1588_v12 = vpop.permute.xlu0 %1587 }
 0x633   : > { %1590 = vst.msk [vmem:[#allocation3 + $0x8] sm:$0xff] %vm1279_vm2, %v1588_v12 }
 0x697   : > { %v1667_v16 = vpop.xlane.xlu2 %1666 }
 0x698   : > { %v1672_v17 = vadd.f32 %v2410_v13, %v1667_v16  ;;  %v1637_v18 = vpop.f32.mrf.mxu0  ;;  %v1650_v19 = vpop.f32.mrf.mxu1 }
 0x699   : > { %v1638_v20 = vadd.f32 %v1637_v18, %v1598_v14  ;;  %v1651_v21 = vadd.f32 %v1650_v19, %v1599_v15 }
 0x69a   : > { %v1673_v23 = vmul.f32 0.5, %v1672_v17 }
 0x69b   : > { %v1677_v24 = vsub.f32 %v1651_v21, %v1638_v20 }
 0x69c   : > { %2431 = vtanh.f32 %v1673_v23 }
 0x6a0   : > { %v1639_v25 = vpop.f32.mrf.mxu0  ;;  %v1652_v27 = vpop.f32.mrf.mxu1 }
 0x6a2   : > { %v2432_v28 = vpop.eup %2431 }
 0x6a3   : > { %v1675_v29 = vadd.f32 1.0, %v2432_v28 }
 0x6a5   : > { %v1676_v30 = vmul.f32 0.5, %v1675_v29 }
 0x6a7   : > { %1680 = vperm.xlu1 %2399, %v1676_v30  }
 0x719   : > { %v1681_v31 = vpop.permute.xlu1 %1680 }
 0x71a   : > { %v1683_v32 = vmul.f32 %v1681_v31, %v1677_v24  ;;  %1689 = sbr.rel (%p2187_p5) target bundleno = 1828 (0x724), region = 168 }
 0x71c   : > { %v1684_v33 = vadd.f32 %v1683_v32, %v1638_v20 }
 0x71e   : > { %1685 = vst [vmem:[%s3397_s0] sm:$0xff] %v1684_v33 }
 0x71f   : > { %v1690_v34 = vld [vmem:[#allocation2] sm:$0xff]  ;;  %v1691_v35 = vld [vmem:[#allocation2 + $0x8] sm:$0xff]  ;;  %v1694_v36 = vld [vmem:[#allocation3] sm:$0xff] }
 0x720   : > { %1692 = vst.msk [vmem:[#allocation23] sm:$0xff] %vm1279_vm2, %v1690_v34  ;;  %v1695_v37 = vld [vmem:[#allocation3 + $0x8] sm:$0xff] }
 0x721   : > { %1693 = vst.msk [vmem:[#allocation23 + $0x8] sm:$0xff] %vm1279_vm2, %v1691_v35 }
 0x722   : > { %1696 = vst.msk [vmem:[#allocation25] sm:$0xff] %vm1279_vm2, %v1694_v36 }
 0x723   : > { %1697 = vst.msk [vmem:[#allocation25 + $0x8] sm:$0xff] %vm1279_vm2, %v1695_v37 }
 0x724 PF: > { %s2988_s20 = smov [#allocation23]   ;;  %s3687_s17 = sld [smem:[#allocation40_spill]] }
 0x725   : > { %s1725_s6 = sshll.u32 %s2988_s20, 4  ;;  %s3688_s11 = sld [smem:[#allocation69_spill]]  ;;  %s1726_s6 = int_to_ptr.vmem [resolvable:$true] %s1725_s6 }
 0x726   : > { %s2989_s1 = smov 128   ;;  %s2990_s14 = smov 8  }
 0x727   : > { %s3689_s15 = sld [smem:[#allocation68_spill]]  ;;  %s1712_s25 = sshll.u32 %s3397_s0, 4  ;;  %s1713_s25 = int_to_ptr.vmem [resolvable:$true] %s1712_s25 }
 0x728   : > { %s1699_s12 = scalar_lea.sflag [#allocation6], %s3310_s10 }
 0x72a   : > { %s2189_s22 = sshll.u32 %s3687_s17, 3 }
 0x72b   : > { %s1727_s24 = sshll.u32 %s3688_s11, 4  ;;  %s1728_s24 = int_to_ptr.hbm [resolvable:$true] %s1727_s24 }
 0x72c   : > { %2258 = dma.vmem_to_hbm [thread:$0]  (%p631_p11), %s1726_s6, 256, %s1728_s24, [#allocation24], %s2989_s1, %s2989_s1, %s2990_s14  }
 0x72d   : > { %s1710_s13 = scalar_lea.hbm %s3689_s15, %s2189_s22  ;;  %s2841_s21 = scalar_lea.hbm %s3689_s15, 64 }
 0x72e   : > { %s1714_s9 = sshll.u32 %s1710_s13, 4  ;;  %s1715_s9 = int_to_ptr.hbm [resolvable:$true] %s1714_s9 }
 0x72f   : > { %s2835_s8 = sshra.s32 %s1715_s9, 4  ;;  %s2836_s8 = int_to_ptr.hbm [resolvable:$true] %s2835_s8 }
 0x730   : > { %s2837_s19 = scalar_lea.hbm %s2836_s8, 8  ;;  %p2842_p12 = scmp.lt.s32.totalorder %s2836_s8, %s3689_s15 }
 0x731   : > { %p2838_p8 = scmp.ne.s32.totalorder %s2836_s8, %s2837_s19  ;;  %p2843_p13 = scmp.lt.s32.totalorder %s2841_s21, %s2837_s19 }
 0x733   : > { %p2839_p9 = pnand %p2838_p8, %p3234_p0  ;;  %p2844_p2 = por %p2843_p13, %p2842_p12 }
 0x735   : > { %p2840_p10 = pneg %p2839_p9 }
 0x737   : > { %p2845_p6 = pnand %p2844_p2, %p2840_p10 }
 0x739   : > { %2848 = shalt.err (!%p2845_p6)
}
 0x73a   : > { %2256 = dma.vmem_to_hbm [thread:$0]  (%p3234_p0), %s1713_s25, 128, %s1715_s9, %s1699_s12  }
 0x73b   : > { %s2991_s10 = smov [#allocation25]   ;;  %s3690_s7 = sld [smem:[#allocation70_spill]] }
 0x73c   : > { %s1741_s0 = sshll.u32 %s2991_s10, 4  ;;  %s1742_s0 = int_to_ptr.vmem [resolvable:$true] %s1741_s0 }
 0x741   : > { %s1743_s2 = sshll.u32 %s3690_s7, 4  ;;  %s1744_s2 = int_to_ptr.hbm [resolvable:$true] %s1743_s2 }
 0x742   : > { %2260 = dma.vmem_to_hbm [thread:$0]  (%p631_p11), %s1742_s0, 256, %s1744_s2, [#allocation24], %s2989_s1, %s2989_s1, %s2990_s14  }
 0x743   : > { %2942 = dma.done.wait (%p631_p11), [#allocation24], 512  }
 0x744   : > { %2944 = vsyncadd (%p631_p11), [#allocation24], 4294966784 }
 0x745 PF: > { %p2331_p0 = scmp.ge.s32.totalorder %s2971_s3, 2  ;;  %s1768_s11 = sand.u32 1, %s2951_s29  }
 0x746   : > { %s1769_s24 = scalar_lea.sflag [#allocation6], %s1768_s11 }
 0x747   : > { %p2305_p7 = pnand %p2331_p0, %p3241_p4 }
 0x749   : > { %p2306_p3 = pneg %p2305_p7 }
 0x74b   : > { %2946 = dma.done.wait (%p2306_p3), %s1769_s24, 128  }
 0x74c   : > { %2948 = vsyncadd (%p2306_p3), %s1769_s24, 4294967168  ;;  %s49_s3 = sadd.s32 1, %s2971_s3   ;;  %s3692_s29 = sld [smem:[#allocation38_spill]] }
 0x74d   : > { %p46_p1 = scmp.ge.s32.totalorder %s49_s3, 10   ;;  %s3693_s2 = sld [smem:[#allocation39_spill]] }
 0x74e   : > { %s3694_s6 = sld [smem:[#allocation43_spill]] }
 0x74f   : > { %s3695_s30 = sld [smem:[#allocation41_spill]]  ;;  %48 = sbr.rel (!%p46_p1) target bundleno = 39 (0x27), region = 275 }
 0x750   : > { %s3696_s7 = sld [smem:[#allocation42_spill]] }
 0x754   :  { %1775 = vsyncpa [#allocation5], 1 }
 0x755   :  { %1777 = vsyncpa [#allocation5 + $0x1], 1 }
 0x756   :  { %1778 = vsyncpa [#allocation8], 1 }
 0x757   :  { %1780 = vsyncpa [#allocation8 + $0x1], 1 }
 0x758   :  { %1781 = vsyncpa [#allocation11], 1 }
 0x759   :  { %1782 = vsyncpa [#allocation14], 1 }
 0x75a   :  { %1783 = vsyncpa [#allocation20], 1 }
 0x75b   :  { %1784 = vsyncpa [#allocation6], 1 }
 0x75c   :  { %1786 = vsyncpa [#allocation6 + $0x1], 1 }
 0x75d   :  { %1787 = vsyncpa [#allocation24], 1 }

</bundles_post_ra>
